<compile_context>
chip_gen: v6e
topology: v6e:2x2x1
jax: 0.10.0
libtpu: 0.0.40
codegen_flags: <defaults>
</compile_context>

<pallas_src>
import math
from functools import partial

import jax
import jax.numpy as jnp
from jax.experimental import pallas as pl
from jax.experimental.pallas import tpu as pltpu  # noqa: F401  (TPU backend)

# ----------------------------- configuration --------------------------------
BS = 2                # batch size
NUM_FRAMES = 2        # temporal frames coming out of the backbone
NUM_QUERIES = 8       # object queries
HIDDEN = 32           # hidden_dim
NUM_CLASSES = 10
NUM_DEC_LAYERS = 3    # transformer.decoder.num_layers (with_box_refine clones)
NUM_GROUPS = 32       # GroupNorm(32, hidden_dim)
H = W = 8             # backbone feature spatial size
IN_CHANNELS = [16, 32]  # backbone.num_channels[1:] (two feature levels)
HEAD_LANES = 128      # lane-dense fused output / weight-slab width


# ------------- Kernel A: 1x1 conv + GroupNorm, all levels fused --------------
def input_proj_gn_kernel(x_ref, w_ref, b_ref, g_ref, be_ref, o_ref, *, n, hw):
    """Channels-first fused Conv2d(k=1) + GroupNorm(32, C) for all levels.

    x_ref : (L, Cin_pad, N*HW)  bf16  (Cin zero-padded to the max level width)
    w_ref : (L, Cout, Cin_pad)  bf16
    b/g/be: (L, Cout, 1)        f32
    o_ref : (L, Cout, N*HW)     f32   lane-dense (N*HW is a multiple of 128)
    """
    num_levels = x_ref.shape[0]
    nhw = n * hw
    inv_hw = 1.0 / hw

    # Per-sample segment-membership matrices for lane-axis reductions.
    # sample id of lane i is floor(i / hw); float trick avoids int division.
    r = jax.lax.broadcasted_iota(jnp.int32, (nhw, n), 0).astype(jnp.float32)
    c = jax.lax.broadcasted_iota(jnp.int32, (nhw, n), 1).astype(jnp.float32)
    seg = jnp.where(jnp.floor(r * inv_hw) == c, 1.0, 0.0).astype(jnp.float32)
    rt = jax.lax.broadcasted_iota(jnp.int32, (n, nhw), 1).astype(jnp.float32)
    ct = jax.lax.broadcasted_iota(jnp.int32, (n, nhw), 0).astype(jnp.float32)
    seg_t = jnp.where(jnp.floor(rt * inv_hw) == ct, inv_hw, 0.0).astype(jnp.float32)

    for l in range(num_levels):                      # static unroll (L is tiny)
        # 1x1 conv as one (Cout, Cin) x (Cin, N*HW) matmul; bf16 in, f32 accum.
        y = jnp.dot(w_ref[l], x_ref[l],
                    preferred_element_type=jnp.float32) + b_ref[l]   # (Cout, N*HW)
        # GroupNorm(32, 32): group size == 1 -> per-(sample, channel) stats
        # over HW.  Segment matmuls (MXU) replace a lane-crossing reshape.
        # TODO(synk): generalize to group_size > 1 (needs a channel->group reduce).
        mean = jnp.dot(jnp.dot(y, seg, preferred_element_type=jnp.float32),
                       seg_t, preferred_element_type=jnp.float32)     # (Cout, N*HW)
        cen = y - mean
        var = jnp.dot(jnp.dot(cen * cen, seg, preferred_element_type=jnp.float32),
                      seg_t, preferred_element_type=jnp.float32)
        yn = cen * jax.lax.rsqrt(var + 1e-5)
        o_ref[l] = (yn * g_ref[l] + be_ref[l]).astype(o_ref.dtype)


def build_input_proj_params(ws, bs_, gammas, betas, num_groups=NUM_GROUPS):
    """Pad/stack the static input_proj parameters ONCE (not per forward call).

    ws[l]: (Cout, Cin_l) 1x1-conv weight (PyTorch Conv2d layout, squeezed).
    """
    cout = ws[0].shape[0]
    assert cout % num_groups == 0 and cout // num_groups == 1, (
        "kernel specializes GroupNorm to group_size == 1 (GroupNorm(32, 32))")
    cin_max = max(w.shape[1] for w in ws)
    wk = jnp.stack([jnp.pad(w.astype(jnp.float32),
                            ((0, 0), (0, cin_max - w.shape[1]))) for w in ws])
    wk = wk.astype(jnp.bfloat16)                                 # (L, Cout, Cin_pad)
    bk = jnp.stack([b.reshape(cout, 1).astype(jnp.float32) for b in bs_])
    gk = jnp.stack([g.reshape(cout, 1).astype(jnp.float32) for g in gammas])
    bek = jnp.stack([b.reshape(cout, 1).astype(jnp.float32) for b in betas])
    return dict(wk=wk, bk=bk, gk=gk, bek=bek, cin_max=cin_max, cout=cout)


def input_proj_groupnorm(feats, params):
    """Conv2d(k=1) + GroupNorm for ALL feature levels in ONE pallas_call."""
    num_levels = len(feats)
    n, _, hh, ww = feats[0].shape
    hw = hh * ww
    cout, cin_max = params["cout"], params["cin_max"]

    # wrapper-side layout plumbing: channels-first (Cin, N*HW) slabs (NCHW is
    # already (C, HW) per sample); zero-pad Cin so all levels share one shape.
    x_lvls = []
    for f in feats:
        cin = f.shape[1]
        xl = jnp.transpose(f.reshape(n, cin, hw), (1, 0, 2)).reshape(cin, n * hw)
        x_lvls.append(jnp.pad(xl, ((0, cin_max - cin), (0, 0))))
    x = jnp.stack(x_lvls).astype(jnp.bfloat16)           # (L, Cin_pad, N*HW)

    out = pl.pallas_call(
        partial(input_proj_gn_kernel, n=n, hw=hw),
        out_shape=jax.ShapeDtypeStruct((num_levels, cout, n * hw), jnp.float32),
    )(x, params["wk"], params["bk"], params["gk"], params["bek"])

    projs = []
    for l in range(num_levels):
        p = out[l].reshape(cout, n, hh, ww)
        projs.append(jnp.transpose(p, (1, 0, 2, 3)))      # back to NCHW
    return projs


# ----------------- Kernel B: per-level detection head ------------------------
def head_kernel(hs_ref, ref_ref, wf_ref, bf_ref, w2_ref, b2_ref, w3_ref, b3_ref,
                o_ref, *, c, d):
    """Detection head for all decoder levels in one invocation.

    Output lane layout (built in place, no slices / concatenate):
      [0:c)        class logits                  (class_embed[lvl])
      [c:c+4)      box = sigmoid(bbox_mlp + inverse_sigmoid(reference))
      [c+4:c+7)    binary logits                 (class_embed_b, shared)
      [c+7:c+7+d)  bbox layer-1 pre-activation   (scratch lanes, sliced off)
    """
    num_levels, bq, lanes = o_ref.shape
    eps = 1e-5
    lane = jax.lax.broadcasted_iota(jnp.int32, (bq, lanes), 1)
    box_mask = (lane >= c) & (lane < c + 4)

    for l in range(num_levels):                            # static unroll
        # Fused matmul: hs[lvl] @ [wc | 0 | wb | w1 | 0]; bf16 in, f32 accum.
        z = jnp.dot(hs_ref[l], wf_ref[l],
                    preferred_element_type=jnp.float32) + bf_ref[l]    # (BQ, 128)
        a1 = jnp.maximum(z, 0.0)       # relu; w2p's zero rows kill non-bbox lanes
        t2 = jnp.dot(a1.astype(jnp.bfloat16), w2_ref[l],
                     preferred_element_type=jnp.float32) + b2_ref[l]   # (BQ, d)
        t2 = jnp.maximum(t2, 0.0)
        t3 = jnp.dot(t2.astype(jnp.bfloat16), w3_ref[l],
                     preferred_element_type=jnp.float32) + b3_ref[l]   # (BQ, 128)

        # tmp += inverse_sigmoid(reference); outputs_coord = tmp.sigmoid()
        # (reference pre-padded with 0.5 -> inverse_sigmoid == 0 off box lanes)
        rp = jnp.clip(ref_ref[l], 0.0, 1.0)
        inv_sig = jnp.log(jnp.maximum(rp, eps)) - jnp.log(jnp.maximum(1.0 - rp, eps))
        box_full = jax.nn.sigmoid(t3 + inv_sig)

        # Single lane-masked combine -> one lane-dense (BQ, 128) store.
        o_ref[l] = jnp.where(box_mask, box_full, z).astype(o_ref.dtype)


def build_head_params(wc, bc, w1, b1, w2, b2, w3, b3, wb, bb, lanes=HEAD_LANES):
    """Fuse / pad the static detection-head weights ONCE.

    Fused slab column order == output lane order: [wc | box-0 | wb | w1 | 0].
    """
    num_l, d, c = wc.shape
    assert c + 4 + 3 + d <= lanes
    f32 = jnp.float32
    wb_l = jnp.tile(wb[None].astype(f32), (num_l, 1, 1))        # shared binary head
    bb_l = jnp.tile(bb[None].astype(f32), (num_l, 1, 1))
    tail = lanes - (c + 4 + 3 + d)
    wf = jnp.concatenate(
        [wc.astype(f32), jnp.zeros((num_l, d, 4), f32), wb_l, w1.astype(f32),
         jnp.zeros((num_l, d, tail), f32)], axis=2)             # (L, d, 128)
    bf = jnp.concatenate(
        [bc.astype(f32), jnp.zeros((num_l, 1, 4), f32), bb_l, b1.astype(f32),
         jnp.zeros((num_l, 1, tail), f32)], axis=2)             # (L, 1, 128)
    # bbox layer 2 consumes only the w1 lanes of relu(z): zero-pad its rows.
    w2p = jnp.zeros((num_l, lanes, d), f32).at[:, c + 7:c + 7 + d, :].set(w2)
    # bbox layer 3 writes the 4 box columns at their FINAL lane offset [c:c+4).
    w3p = jnp.zeros((num_l, d, lanes), f32).at[:, :, c:c + 4].set(w3)
    b3p = jnp.zeros((num_l, 1, lanes), f32).at[:, :, c:c + 4].set(b3)
    return dict(wf=wf.astype(jnp.bfloat16), bf=bf,
                w2p=w2p.astype(jnp.bfloat16), b2=b2.astype(f32),
                w3p=w3p.astype(jnp.bfloat16), b3p=b3p,
                c=c, d=d, lanes=lanes)


def detection_head(hs, refs, params):
    num_l, b, q, d = hs.shape
    c, lanes = params["c"], params["lanes"]
    assert d == params["d"]
    bq = b * q

    hs2 = hs.reshape(num_l, bq, d).astype(jnp.bfloat16)
    refs2 = refs.reshape(num_l, bq, 4).astype(jnp.float32)
    # reference placed at its final lane offset; 0.5 fill -> inverse_sigmoid 0.
    ref_pad = jnp.full((num_l, bq, lanes), 0.5, jnp.float32)
    ref_pad = ref_pad.at[:, :, c:c + 4].set(refs2)

    out = pl.pallas_call(
        partial(head_kernel, c=c, d=d),
        out_shape=jax.ShapeDtypeStruct((num_l, bq, lanes), jnp.float32),
    )(hs2, ref_pad, params["wf"], params["bf"], params["w2p"], params["b2"],
      params["w3p"], params["b3p"])

    out = out.reshape(num_l, b, q, lanes)
    outputs_class = out[..., :c]
    outputs_coord = out[..., c:c + 4]
    outputs_class_b = out[..., c + 4:c + 4 + 3]
    return outputs_class, outputs_coord, outputs_class_b


# ------------------------------- driver --------------------------------------
if __name__ == "__main__":
    key = jax.random.PRNGKey(0)
    ks = list(jax.random.split(key, 32))

    # ---- backbone features (stand-in; backbone is an external module) ----
    # TODO(synk): the backbone (CSN-152) is passed into __init__ and not defined
    # in this file; synthetic feature maps stand in for features[1:].
    feats = [jax.random.normal(ks[li], (BS * NUM_FRAMES, cin, H, W), dtype=jnp.float32)
             for li, cin in enumerate(IN_CHANNELS)]

    # input_proj parameters (xavier-uniform weights, zero bias; GN gamma=1 beta=0)
    ws, bs_, gammas, betas = [], [], [], []
    for li, cin in enumerate(IN_CHANNELS):
        bound = math.sqrt(6.0 / (cin + HIDDEN))
        ws.append(jax.random.uniform(ks[4 + li], (HIDDEN, cin),
                                     minval=-bound, maxval=bound, dtype=jnp.float32))
        bs_.append(jnp.zeros((HIDDEN,), jnp.float32))
        gammas.append(jnp.ones((HIDDEN,), jnp.float32))
        betas.append(jnp.zeros((HIDDEN,), jnp.float32))
    proj_params = build_input_proj_params(ws, bs_, gammas, betas)  # built ONCE

    projs = input_proj_groupnorm(feats, proj_params)      # ONE pallas_call, no grid
    srcs = []
    for proj in projs:
        proj5d = proj.reshape(BS, NUM_FRAMES, HIDDEN, H, W)
        # TODO(synk): LSTRTransformerDecoder pool_decoder (temporal query pooling)
        # is not defined in the source; temporal mean used as a placeholder.
        srcs.append(jnp.mean(proj5d, axis=1))             # (BS, C, H, W)

    # ---- DAB query construction (use_dab=True, num_patterns=0) ----
    tgt_embed = jax.random.normal(ks[8], (NUM_QUERIES, HIDDEN - 1), dtype=jnp.float32)
    refpoint_embed = jax.random.normal(ks[9], (NUM_QUERIES, 4), dtype=jnp.float32)
    # TODO(synk): prepare_for_dn (denoising query construction) is external and
    # undefined; non-DN fallback (indicator-0 concat) used, mask_dict = None.
    indicator0 = jnp.zeros((NUM_QUERIES, 1), jnp.float32)
    input_query_label = jnp.tile(
        jnp.concatenate([tgt_embed, indicator0], axis=1)[None], (BS, 1, 1))
    input_query_bbox = jnp.tile(refpoint_embed[None], (BS, 1, 1))
    query_embeds = jnp.concatenate([input_query_label, input_query_bbox], axis=2)

    # ---- transformer (stand-in; deformable transformer is external) ----
    # TODO(synk): the deformable transformer is passed into __init__ and not
    # defined here; hs / init_reference / inter_references are synthesized.
    hs = jax.random.normal(ks[10], (NUM_DEC_LAYERS, BS, NUM_QUERIES, HIDDEN),
                           dtype=jnp.float32)
    init_reference = jax.nn.sigmoid(
        jax.random.normal(ks[11], (BS, NUM_QUERIES, 4), dtype=jnp.float32))
    inter_references = jax.nn.sigmoid(
        jax.random.normal(ks[12], (NUM_DEC_LAYERS, BS, NUM_QUERIES, 4),
                          dtype=jnp.float32))
    refs_all = jnp.concatenate(
        [init_reference[None], inter_references[:NUM_DEC_LAYERS - 1]], axis=0)

    # ---- detection-head parameters (distinct per level, with_box_refine) ----
    bias_value = -math.log((1 - 0.01) / 0.01)
    wc = 0.02 * jax.random.normal(ks[13], (NUM_DEC_LAYERS, HIDDEN, NUM_CLASSES),
                                  dtype=jnp.float32)
    bc = jnp.full((NUM_DEC_LAYERS, 1, NUM_CLASSES), bias_value, jnp.float32)
    w1 = 0.02 * jax.random.normal(ks[14], (NUM_DEC_LAYERS, HIDDEN, HIDDEN),
                                  dtype=jnp.float32)
    b1 = 0.02 * jax.random.normal(ks[15], (NUM_DEC_LAYERS, 1, HIDDEN), dtype=jnp.float32)
    w2 = 0.02 * jax.random.normal(ks[16], (NUM_DEC_LAYERS, HIDDEN, HIDDEN),
                                  dtype=jnp.float32)
    b2 = 0.02 * jax.random.normal(ks[17], (NUM_DEC_LAYERS, 1, HIDDEN), dtype=jnp.float32)
    # last bbox layer init to zero; the spec clones bbox_embed FIRST and then
    # sets bbox_embed[0].layers[-1].bias[2:] = -2.0, so only level 0 gets it.
    w3 = jnp.zeros((NUM_DEC_LAYERS, HIDDEN, 4), jnp.float32)
    b3 = jnp.zeros((NUM_DEC_LAYERS, 1, 4), jnp.float32).at[0, 0, 2:].set(-2.0)
    wb = 0.02 * jax.random.normal(ks[18], (HIDDEN, 3), dtype=jnp.float32)
    bb = 0.02 * jax.random.normal(ks[19], (1, 3), dtype=jnp.float32)
    head_params = build_head_params(wc, bc, w1, b1, w2, b2, w3, b3, wb, bb)  # ONCE

    outputs_class, outputs_coord, outputs_class_b = detection_head(
        hs, refs_all, head_params)                        # ONE pallas_call, no grid

    # TODO(synk): dn_post_process is external and undefined; with mask_dict=None
    # (no denoising queries) it is the identity.
    out = {
        "pred_logits": outputs_class[-1],
        "pred_boxes": outputs_coord[-1],
        "pred_logits_b": outputs_class_b[-1],
    }

    jax.block_until_ready(out["pred_logits"])
    jax.block_until_ready(out["pred_boxes"])
    jax.block_until_ready(out["pred_logits_b"])
    jax.block_until_ready(srcs[0])
    jax.block_until_ready(query_embeds)

    assert out["pred_logits"].shape == (BS, NUM_QUERIES, NUM_CLASSES)
    assert out["pred_boxes"].shape == (BS, NUM_QUERIES, 4)
    assert out["pred_logits_b"].shape == (BS, NUM_QUERIES, 3)
    assert srcs[0].shape == (BS, HIDDEN, H, W)
    print("KERNEL_OK")
</pallas_src>

<mosaic_0001>
module attributes {stable_mosaic.version = 11 : i64} {
  func.func @input_proj_gn_kernel(%arg0: memref<2x32x256xbf16, #tpu.memory_space<vmem>>, %arg1: memref<2x32x32xbf16, #tpu.memory_space<vmem>>, %arg2: memref<2x32x1xf32, #tpu.memory_space<vmem>>, %arg3: memref<2x32x1xf32, #tpu.memory_space<vmem>>, %arg4: memref<2x32x1xf32, #tpu.memory_space<vmem>>, %arg5: memref<2x32x256xf32, #tpu.memory_space<vmem>>) attributes {dimension_semantics = [], scalar_prefetch = 0 : i64, scratch_operands = 0 : i64, tpu.core_type = #tpu.core_type<tc>} {
    %0 = tpu.iota {dimensions = array<i32: 0>} : vector<256x4xi32>
    %1 = arith.sitofp %0 : vector<256x4xi32> to vector<256x4xf32>
    %2 = tpu.iota {dimensions = array<i32: 1>} : vector<256x4xi32>
    %3 = arith.sitofp %2 : vector<256x4xi32> to vector<256x4xf32>
    %cst = arith.constant 1.562500e-02 : f32
    %4 = vector.broadcast %cst : f32 to vector<256x4xf32>
    %5 = arith.mulf %1, %4 : vector<256x4xf32>
    %6 = math.floor %5 : vector<256x4xf32>
    %7 = arith.cmpf oeq, %6, %3 : vector<256x4xf32>
    %cst_0 = arith.constant 1.000000e+00 : f32
    %cst_1 = arith.constant 0.000000e+00 : f32
    %8 = vector.broadcast %cst_0 : f32 to vector<256x4xf32>
    %9 = vector.broadcast %cst_1 : f32 to vector<256x4xf32>
    %10 = arith.select %7, %8, %9 : vector<256x4xi1>, vector<256x4xf32>
    %11 = tpu.iota {dimensions = array<i32: 1>} : vector<4x256xi32>
    %12 = arith.sitofp %11 : vector<4x256xi32> to vector<4x256xf32>
    %13 = tpu.iota {dimensions = array<i32: 0>} : vector<4x256xi32>
    %14 = arith.sitofp %13 : vector<4x256xi32> to vector<4x256xf32>
    %cst_2 = arith.constant 1.562500e-02 : f32
    %15 = vector.broadcast %cst_2 : f32 to vector<4x256xf32>
    %16 = arith.mulf %12, %15 : vector<4x256xf32>
    %17 = math.floor %16 : vector<4x256xf32>
    %18 = arith.cmpf oeq, %17, %14 : vector<4x256xf32>
    %cst_3 = arith.constant 1.562500e-02 : f32
    %cst_4 = arith.constant 0.000000e+00 : f32
    %19 = vector.broadcast %cst_3 : f32 to vector<4x256xf32>
    %20 = vector.broadcast %cst_4 : f32 to vector<4x256xf32>
    %21 = arith.select %18, %19, %20 : vector<4x256xi1>, vector<4x256xf32>
    %c0 = arith.constant 0 : index
    %c0_5 = arith.constant 0 : index
    %c0_6 = arith.constant 0 : index
    %22 = vector.load %arg1[%c0, %c0_5, %c0_6] : memref<2x32x32xbf16, #tpu.memory_space<vmem>>, vector<1x32x32xbf16>
    %23 = vector.shape_cast %22 : vector<1x32x32xbf16> to vector<32x32xbf16>
    %c0_7 = arith.constant 0 : index
    %c0_8 = arith.constant 0 : index
    %c0_9 = arith.constant 0 : index
    %24 = vector.load %arg0[%c0_7, %c0_8, %c0_9] : memref<2x32x256xbf16, #tpu.memory_space<vmem>>, vector<1x32x256xbf16>
    %25 = vector.shape_cast %24 : vector<1x32x256xbf16> to vector<32x256xbf16>
    %cst_10 = arith.constant dense<0.000000e+00> : vector<32x256xf32>
    %26 = tpu.matmul %23, %25, %cst_10 {dimension_numbers = #tpu.dot_dimension_numbers<[1], [0], [0], [1], [0, 0, 1, 1], [], []>} : vector<32x32xbf16>, vector<32x256xbf16>, vector<32x256xf32> -> vector<32x256xf32>
    %c0_11 = arith.constant 0 : index
    %c0_12 = arith.constant 0 : index
    %c0_13 = arith.constant 0 : index
    %27 = vector.load %arg2[%c0_11, %c0_12, %c0_13] : memref<2x32x1xf32, #tpu.memory_space<vmem>>, vector<1x32x1xf32>
    %28 = vector.shape_cast %27 : vector<1x32x1xf32> to vector<32x1xf32>
    %29 = vector.broadcast %28 : vector<32x1xf32> to vector<32x256xf32>
    %30 = arith.addf %26, %29 : vector<32x256xf32>
    %cst_14 = arith.constant dense<0.000000e+00> : vector<32x4xf32>
    %31 = tpu.matmul %30, %10, %cst_14 {dimension_numbers = #tpu.dot_dimension_numbers<[1], [0], [0], [1], [0, 0, 1, 1], [], []>} : vector<32x256xf32>, vector<256x4xf32>, vector<32x4xf32> -> vector<32x4xf32>
    %cst_15 = arith.constant dense<0.000000e+00> : vector<32x256xf32>
    %32 = tpu.matmul %31, %21, %cst_15 {dimension_numbers = #tpu.dot_dimension_numbers<[1], [0], [0], [1], [0, 0, 1, 1], [], []>} : vector<32x4xf32>, vector<4x256xf32>, vector<32x256xf32> -> vector<32x256xf32>
    %33 = arith.subf %30, %32 : vector<32x256xf32>
    %34 = arith.mulf %33, %33 : vector<32x256xf32>
    %cst_16 = arith.constant dense<0.000000e+00> : vector<32x4xf32>
    %35 = tpu.matmul %34, %10, %cst_16 {dimension_numbers = #tpu.dot_dimension_numbers<[1], [0], [0], [1], [0, 0, 1, 1], [], []>} : vector<32x256xf32>, vector<256x4xf32>, vector<32x4xf32> -> vector<32x4xf32>
    %cst_17 = arith.constant dense<0.000000e+00> : vector<32x256xf32>
    %36 = tpu.matmul %35, %21, %cst_17 {dimension_numbers = #tpu.dot_dimension_numbers<[1], [0], [0], [1], [0, 0, 1, 1], [], []>} : vector<32x4xf32>, vector<4x256xf32>, vector<32x256xf32> -> vector<32x256xf32>
    %cst_18 = arith.constant 9.99999974E-6 : f32
    %37 = vector.broadcast %cst_18 : f32 to vector<32x256xf32>
    %38 = arith.addf %36, %37 : vector<32x256xf32>
    %39 = math.rsqrt %38 : vector<32x256xf32>
    %40 = arith.mulf %33, %39 : vector<32x256xf32>
    %c0_19 = arith.constant 0 : index
    %c0_20 = arith.constant 0 : index
    %c0_21 = arith.constant 0 : index
    %41 = vector.load %arg3[%c0_19, %c0_20, %c0_21] : memref<2x32x1xf32, #tpu.memory_space<vmem>>, vector<1x32x1xf32>
    %42 = vector.shape_cast %41 : vector<1x32x1xf32> to vector<32x1xf32>
    %43 = vector.broadcast %42 : vector<32x1xf32> to vector<32x256xf32>
    %44 = arith.mulf %40, %43 : vector<32x256xf32>
    %c0_22 = arith.constant 0 : index
    %c0_23 = arith.constant 0 : index
    %c0_24 = arith.constant 0 : index
    %45 = vector.load %arg4[%c0_22, %c0_23, %c0_24] : memref<2x32x1xf32, #tpu.memory_space<vmem>>, vector<1x32x1xf32>
    %46 = vector.shape_cast %45 : vector<1x32x1xf32> to vector<32x1xf32>
    %47 = vector.broadcast %46 : vector<32x1xf32> to vector<32x256xf32>
    %48 = arith.addf %44, %47 : vector<32x256xf32>
    %c0_25 = arith.constant 0 : index
    %c0_26 = arith.constant 0 : index
    %c0_27 = arith.constant 0 : index
    %49 = vector.load %arg5[%c0_25, %c0_26, %c0_27] : memref<2x32x256xf32, #tpu.memory_space<vmem>>, vector<1x32x256xf32>
    %50 = vector.shape_cast %49 : vector<1x32x256xf32> to vector<32x256xf32>
    %51 = vector.shape_cast %48 : vector<32x256xf32> to vector<1x32x256xf32>
    tpu.vector_store %arg5[%c0_25, %c0_26, %c0_27], %51 {strides = array<i32>} : memref<2x32x256xf32, #tpu.memory_space<vmem>>, vector<1x32x256xf32>,
    %c1 = arith.constant 1 : index
    %c0_28 = arith.constant 0 : index
    %c0_29 = arith.constant 0 : index
    %52 = vector.load %arg1[%c1, %c0_28, %c0_29] : memref<2x32x32xbf16, #tpu.memory_space<vmem>>, vector<1x32x32xbf16>
    %53 = vector.shape_cast %52 : vector<1x32x32xbf16> to vector<32x32xbf16>
    %c1_30 = arith.constant 1 : index
    %c0_31 = arith.constant 0 : index
    %c0_32 = arith.constant 0 : index
    %54 = vector.load %arg0[%c1_30, %c0_31, %c0_32] : memref<2x32x256xbf16, #tpu.memory_space<vmem>>, vector<1x32x256xbf16>
    %55 = vector.shape_cast %54 : vector<1x32x256xbf16> to vector<32x256xbf16>
    %cst_33 = arith.constant dense<0.000000e+00> : vector<32x256xf32>
    %56 = tpu.matmul %53, %55, %cst_33 {dimension_numbers = #tpu.dot_dimension_numbers<[1], [0], [0], [1], [0, 0, 1, 1], [], []>} : vector<32x32xbf16>, vector<32x256xbf16>, vector<32x256xf32> -> vector<32x256xf32>
    %c1_34 = arith.constant 1 : index
    %c0_35 = arith.constant 0 : index
    %c0_36 = arith.constant 0 : index
    %57 = vector.load %arg2[%c1_34, %c0_35, %c0_36] : memref<2x32x1xf32, #tpu.memory_space<vmem>>, vector<1x32x1xf32>
    %58 = vector.shape_cast %57 : vector<1x32x1xf32> to vector<32x1xf32>
    %59 = vector.broadcast %58 : vector<32x1xf32> to vector<32x256xf32>
    %60 = arith.addf %56, %59 : vector<32x256xf32>
    %cst_37 = arith.constant dense<0.000000e+00> : vector<32x4xf32>
    %61 = tpu.matmul %60, %10, %cst_37 {dimension_numbers = #tpu.dot_dimension_numbers<[1], [0], [0], [1], [0, 0, 1, 1], [], []>} : vector<32x256xf32>, vector<256x4xf32>, vector<32x4xf32> -> vector<32x4xf32>
    %cst_38 = arith.constant dense<0.000000e+00> : vector<32x256xf32>
    %62 = tpu.matmul %61, %21, %cst_38 {dimension_numbers = #tpu.dot_dimension_numbers<[1], [0], [0], [1], [0, 0, 1, 1], [], []>} : vector<32x4xf32>, vector<4x256xf32>, vector<32x256xf32> -> vector<32x256xf32>
    %63 = arith.subf %60, %62 : vector<32x256xf32>
    %64 = arith.mulf %63, %63 : vector<32x256xf32>
    %cst_39 = arith.constant dense<0.000000e+00> : vector<32x4xf32>
    %65 = tpu.matmul %64, %10, %cst_39 {dimension_numbers = #tpu.dot_dimension_numbers<[1], [0], [0], [1], [0, 0, 1, 1], [], []>} : vector<32x256xf32>, vector<256x4xf32>, vector<32x4xf32> -> vector<32x4xf32>
    %cst_40 = arith.constant dense<0.000000e+00> : vector<32x256xf32>
    %66 = tpu.matmul %65, %21, %cst_40 {dimension_numbers = #tpu.dot_dimension_numbers<[1], [0], [0], [1], [0, 0, 1, 1], [], []>} : vector<32x4xf32>, vector<4x256xf32>, vector<32x256xf32> -> vector<32x256xf32>
    %cst_41 = arith.constant 9.99999974E-6 : f32
    %67 = vector.broadcast %cst_41 : f32 to vector<32x256xf32>
    %68 = arith.addf %66, %67 : vector<32x256xf32>
    %69 = math.rsqrt %68 : vector<32x256xf32>
    %70 = arith.mulf %63, %69 : vector<32x256xf32>
    %c1_42 = arith.constant 1 : index
    %c0_43 = arith.constant 0 : index
    %c0_44 = arith.constant 0 : index
    %71 = vector.load %arg3[%c1_42, %c0_43, %c0_44] : memref<2x32x1xf32, #tpu.memory_space<vmem>>, vector<1x32x1xf32>
    %72 = vector.shape_cast %71 : vector<1x32x1xf32> to vector<32x1xf32>
    %73 = vector.broadcast %72 : vector<32x1xf32> to vector<32x256xf32>
    %74 = arith.mulf %70, %73 : vector<32x256xf32>
    %c1_45 = arith.constant 1 : index
    %c0_46 = arith.constant 0 : index
    %c0_47 = arith.constant 0 : index
    %75 = vector.load %arg4[%c1_45, %c0_46, %c0_47] : memref<2x32x1xf32, #tpu.memory_space<vmem>>, vector<1x32x1xf32>
    %76 = vector.shape_cast %75 : vector<1x32x1xf32> to vector<32x1xf32>
    %77 = vector.broadcast %76 : vector<32x1xf32> to vector<32x256xf32>
    %78 = arith.addf %74, %77 : vector<32x256xf32>
    %c1_48 = arith.constant 1 : index
    %c0_49 = arith.constant 0 : index
    %c0_50 = arith.constant 0 : index
    %79 = vector.load %arg5[%c1_48, %c0_49, %c0_50] : memref<2x32x256xf32, #tpu.memory_space<vmem>>, vector<1x32x256xf32>
    %80 = vector.shape_cast %79 : vector<1x32x256xf32> to vector<32x256xf32>
    %81 = vector.shape_cast %78 : vector<32x256xf32> to vector<1x32x256xf32>
    tpu.vector_store %arg5[%c1_48, %c0_49, %c0_50], %81 {strides = array<i32>} : memref<2x32x256xf32, #tpu.memory_space<vmem>>, vector<1x32x256xf32>,
    return
  }
}

</mosaic_0001>

<bundles_post_ra>
// kernel: tpu_custom_call.1
= control target key start
LH: loop header
LB: loop body
LE: loop exit
PB: predicated region body
PF: predicated region fallthrough
CT: control target
= control target key end

     0   :  { %v1895_v2 = vmov 0   ;;  %vm2873_vm0 = vcmask 261120   ;;  %s2867_s0 = inlined_call_operand.vmem [shape: bf16[2,32,256], index: 0, kind: input, shape index: {}]   ;;  %s2868_s1 = inlined_call_operand.vmem [shape: bf16[2,32,32], index: 1, kind: input, shape index: {}]   ;;  %s2869_s2 = inlined_call_operand.vmem [shape: f32[2,32,1], index: 2, kind: input, shape index: {}]   ;;  %s2870_s3 = inlined_call_operand.vmem [shape: f32[2,32,1], index: 3, kind: input, shape index: {}]   ;;  %s2871_s4 = inlined_call_operand.vmem [shape: f32[2,32,1], index: 4, kind: input, shape index: {}]   ;;  %s2872_s5 = inlined_call_operand.hbm [shape: f32[2,32,256], index: 5, kind: output, shape index: {}]  }
   0x1   :  { %v1825_v0 = vld [vmem:[%s2867_s0 + $0x14] ss:$8 sps:$4 sm:$0xff]   ;;  %v1827_v1 = vld [vmem:[%s2867_s0 + $0x10] ss:$8 sps:$4 sm:$0xff]   ;;  %329 = vmatprep.mubr.bf16.mxu0 %v1895_v2  ;;  %1823 = vset.pattern.permute.xlu0 %v1895_v2  ;;  %v1828_v3 = vld [vmem:[%s2867_s0 + $0x4] ss:$8 sps:$4 sm:$0xff]  }
   0x2   :  { %309 = vmatprep.subr.bf16.mxu0 %v1825_v0  ;;  %1824 = vset.pattern.permute.xlu1 %v1895_v2  ;;  %v1830_v4 = vld [vmem:[%s2867_s0] ss:$8 sps:$4 sm:$0xff]   ;;  %v238_v6 = vld [vmem:[%s2869_s2 + $0x10] sm:$0xff]  ;;  %v239_v9 = vld [vmem:[%s2869_s2 + $0x18] sm:$0xff] }
   0x3   :  { %310 = vmatpush1.bf16.msra.mxu0 %v1827_v1  ;;  %v236_v5 = vld [vmem:[%s2869_s2] sm:$0xff]  ;;  %v237_v8 = vld [vmem:[%s2869_s2 + $0x8] sm:$0xff]  ;;  %252 = vperm.xlu1 %1824, %v238_v6   ;;  %v1547_v13 = vld [vmem:[%s2869_s2 + $0x30] sm:$0xff] }
   0x4   :  { %311 = vmatprep.subr.bf16.mxu0 %v1828_v3  ;;  %242 = vperm.xlu0 %1823, %v236_v5   ;;  %v1831_v7 = vld [vmem:[%s2868_s1] sm:$0xff]   ;;  %v1546_v11 = vld [vmem:[%s2869_s2 + $0x28] sm:$0xff]  ;;  %v1548_v14 = vld [vmem:[%s2869_s2 + $0x38] sm:$0xff] }
   0x5   :  { %v1545_v10 = vld [vmem:[%s2869_s2 + $0x20] sm:$0xff]  ;;  %v1832_v12 = vld [vmem:[%s2868_s1 + $0x8] sm:$0xff]  }
   0x7   :  { %312 = vmatpush1.bf16.msra.mxu0 %v1830_v4  ;;  %257 = vperm.xlu1 %1824, %v239_v9  }
   0x8   :  { %247 = vperm.xlu0 %1823, %v237_v8  }
   0xa   :  { %1459 = vmatmul.mubr.msk.bf16.vlgmr.msra.gmra.mxu0 %vm2873_vm0, %v1831_v7 }
   0xb   :  { %339 = vmatprep.mubr.bf16.mxu0 %v1895_v2  ;;  %856 = vperm.xlu1 %1824, %v1546_v11  }
   0xc   :  { %851 = vperm.xlu0 %1823, %v1545_v10  }
   0xd   :  { %10 = vsyncpa [#allocation3], 0  ;;  %v22_v15 = vlaneseq  ;;  %v762_v16 = vld [vmem:[%s2870_s3] sm:$0xff]  ;;  %v763_v19 = vld [vmem:[%s2870_s3 + $0x8] sm:$0xff]  ;;  %v2932_v60 = vmov 1.0   ;;  %v2946_v61 = vmov 0 }
   0xe   :  { %v764_v28 = vld [vmem:[%s2870_s3 + $0x10] sm:$0xff]  ;;  %v765_v33 = vld [vmem:[%s2870_s3 + $0x18] sm:$0xff]  ;;  %v1633_v46 = vld [vmem:[%s2870_s3 + $0x20] sm:$0xff]  ;;  %v2948_v62 = vmov 0  ;;  %v2950_v63 = vmov 0  ;;  %v2952_v3 = vmov 0 }
   0xf   :  { %866 = vperm.xlu1 %1824, %v1548_v14   ;;  %v1982_v17 = vshrl.u32 %v22_v15, 7  ;;  %v1984_v18 = vand.u32 127, %v22_v15  ;;  %v1634_v51 = vld [vmem:[%s2870_s3 + $0x28] sm:$0xff]  ;;  %v1635_v1 = vld [vmem:[%s2870_s3 + $0x30] sm:$0xff]  ;;  %v2954_v4 = vmov 0  ;;  %v1636_v7 = vld [vmem:[%s2870_s3 + $0x38] sm:$0xff] }
  0x10   :  { %861 = vperm.xlu0 %1823, %v1547_v13  }
  0x11   :  { %v54_v20 = vadd.s32 248, %v1982_v17  ;;  %v1991_v21 = vcvt.s32.f32 %v1984_v18  ;;  %v38_v22 = vadd.s32 120, %v1982_v17  ;;  %v53_v23 = vadd.s32 240, %v1982_v17 }
  0x12   :  { %1460 = vmatmul.mubr.msk.bf16.gmra.mxu0 %vm2873_vm0, %v1832_v12  ;;  %v37_v24 = vadd.s32 112, %v1982_v17  ;;  %v52_v25 = vadd.s32 232, %v1982_v17  ;;  %v36_v26 = vadd.s32 104, %v1982_v17  ;;  %v51_v27 = vadd.s32 224, %v1982_v17 }
  0x13   :  { %773 = vperm.xlu1 %1824, %v763_v19   ;;  %v86_v29 = vcvt.s32.f32 %v54_v20  ;;  %v70_v30 = vcvt.s32.f32 %v38_v22  ;;  %v85_v31 = vcvt.s32.f32 %v53_v23  ;;  %v35_v32 = vadd.s32 96, %v1982_v17  ;;  %v794_v23 = vld [vmem:[%s2871_s4] sm:$0xff] }
  0x14   :  { %768 = vperm.xlu0 %1823, %v762_v16   ;;  %v69_v34 = vcvt.s32.f32 %v37_v24  ;;  %v84_v35 = vcvt.s32.f32 %v52_v25  ;;  %v68_v36 = vcvt.s32.f32 %v36_v26  ;;  %v83_v37 = vcvt.s32.f32 %v51_v27 }
  0x15   :  { %v121_v38 = vmul.f32 0.015625, %v86_v29  ;;  %v105_v39 = vmul.f32 0.015625, %v70_v30  ;;  %v120_v40 = vmul.f32 0.015625, %v85_v31  ;;  %v67_v41 = vcvt.s32.f32 %v35_v32 }
  0x16   :  { %v104_v42 = vmul.f32 0.015625, %v69_v34  ;;  %v119_v43 = vmul.f32 0.015625, %v84_v35  ;;  %v103_v44 = vmul.f32 0.015625, %v68_v36  ;;  %v118_v45 = vmul.f32 0.015625, %v83_v37 }
  0x17   :  { %783 = vperm.xlu1 %1824, %v765_v33   ;;  %v153_v47 = vfloor.f32 %v121_v38  ;;  %v137_v48 = vfloor.f32 %v105_v39  ;;  %v152_v49 = vfloor.f32 %v120_v40  ;;  %v102_v50 = vmul.f32 0.015625, %v67_v41  ;;  %v796_v41 = vld [vmem:[%s2871_s4 + $0x10] sm:$0xff] }
  0x18   :  { %778 = vperm.xlu0 %1823, %v764_v28   ;;  %v136_v52 = vfloor.f32 %v104_v42  ;;  %v151_v53 = vfloor.f32 %v119_v43  ;;  %v135_v54 = vfloor.f32 %v103_v44  ;;  %v150_v55 = vfloor.f32 %v118_v45  ;;  %v795_v28 = vld [vmem:[%s2871_s4 + $0x8] sm:$0xff] }
  0x19   :  { %vm2013_vm1 = vcmp.eq.f32.partialorder %v153_v47, %v1991_v21  ;;  %vm2018_vm2 = vcmp.eq.f32.partialorder %v137_v48, %v1991_v21  ;;  %vm2023_vm3 = vcmp.eq.f32.partialorder %v152_v49, %v1991_v21  ;;  %v134_v59 = vfloor.f32 %v102_v50 }
  0x1a   :  { %1641 = vmatprep.subr.msk.mxu1 %vm2013_vm1, %v2932_v60  ;;  %vm2031_vm4 = vcmp.eq.f32.partialorder %v136_v52, %v1991_v21  ;;  %vm2036_vm5 = vcmp.eq.f32.partialorder %v151_v53, %v1991_v21  ;;  %vm2041_vm6 = vcmp.eq.f32.partialorder %v135_v54, %v1991_v21  ;;  %v50_v0 = vadd.s32 216, %v1982_v17 }
  0x1b   :  { %v2947_v61 = vsel %vm2031_vm4, 4294967295, %v2946_v61  ;;  %v2949_v62 = vsel %vm2036_vm5, 4294967295, %v2948_v62  ;;  %v2951_v63 = vsel %vm2041_vm6, 4294967295, %v2950_v63  ;;  %1374 = vperm.xlu1 %1824, %v1634_v51   ;;  %1642 = vmatpush3.msk.msra.mxu1 %vm2018_vm2, %v2932_v60  ;;  %vm2053_vm7 = vcmp.eq.f32.partialorder %v150_v55, %v1991_v21 }
  0x1c   :  { %1369 = vperm.xlu0 %1823, %v1633_v46   ;;  %v2953_v3 = vsel %vm2053_vm7, 4294967295, %v2952_v3  ;;  %vm2058_vm8 = vcmp.eq.f32.partialorder %v134_v59, %v1991_v21  ;;  %v34_v5 = vadd.s32 88, %v1982_v17  ;;  %v49_v6 = vadd.s32 208, %v1982_v17  ;;  %1643 = vmatprep.subr.msk.mxu1 %vm2023_vm3, %v2932_v60  ;;  %v797_v46 = vld [vmem:[%s2871_s4 + $0x18] sm:$0xff] }
  0x1d   :  { %v2955_v4 = vsel %vm2058_vm8, 4294967295, %v2954_v4  ;;  %v82_v8 = vcvt.s32.f32 %v50_v0  ;;  %v33_v9 = vadd.s32 80, %v1982_v17  ;;  %v48_v10 = vadd.s32 200, %v1982_v17  ;;  %1644 = vmatpush3.msk.msra.mxu1 %vm2031_vm4, %v2932_v60 }
  0x1e   :  { %v32_v11 = vadd.s32 72, %v1982_v17  ;;  %v66_v12 = vcvt.s32.f32 %v34_v5  ;;  %v81_v13 = vcvt.s32.f32 %v49_v6  ;;  %v47_v14 = vadd.s32 192, %v1982_v17  ;;  %1645 = vmatprep.subr.msk.mxu1 %vm2036_vm5, %v2932_v60  ;;  %v1637_v5 = vld [vmem:[%s2871_s4 + $0x20] sm:$0xff] }
  0x1f   :  { %v31_v15 = vadd.s32 64, %v1982_v17  ;;  %v117_v16 = vmul.f32 0.015625, %v82_v8  ;;  %v65_v19 = vcvt.s32.f32 %v33_v9  ;;  %v80_v20 = vcvt.s32.f32 %v48_v10  ;;  %1384 = vperm.xlu1 %1824, %v1636_v7   ;;  %1646 = vmatpush3.msk.msra.mxu1 %vm2041_vm6, %v2932_v60  ;;  %v1638_v10 = vld [vmem:[%s2871_s4 + $0x28] sm:$0xff] }
  0x20   :  { %1379 = vperm.xlu0 %1823, %v1635_v1   ;;  %v64_v22 = vcvt.s32.f32 %v32_v11  ;;  %v101_v24 = vmul.f32 0.015625, %v66_v12  ;;  %v116_v25 = vmul.f32 0.015625, %v81_v13  ;;  %v79_v26 = vcvt.s32.f32 %v47_v14  ;;  %1647 = vmatprep.subr.msk.mxu1 %vm2053_vm7, %v2932_v60 }
  0x21   :  { %v63_v27 = vcvt.s32.f32 %v31_v15  ;;  %v149_v29 = vfloor.f32 %v117_v16  ;;  %v100_v30 = vmul.f32 0.015625, %v65_v19  ;;  %v115_v31 = vmul.f32 0.015625, %v80_v20  ;;  %1648 = vmatpush3.msk.msra.mxu1 %vm2058_vm8, %v2932_v60 }
  0x22   :  { %v99_v32 = vmul.f32 0.015625, %v64_v22  ;;  %v133_v33 = vfloor.f32 %v101_v24  ;;  %v148_v34 = vfloor.f32 %v116_v25  ;;  %v114_v35 = vmul.f32 0.015625, %v79_v26  ;;  %v1639_v26 = vld [vmem:[%s2871_s4 + $0x30] sm:$0xff] }
  0x23   :  { %v98_v36 = vmul.f32 0.015625, %v63_v27  ;;  %vm2097_vm9 = vcmp.eq.f32.partialorder %v149_v29, %v1991_v21  ;;  %v2956_v37 = vmov 0  ;;  %v132_v38 = vfloor.f32 %v100_v30  ;;  %805 = vperm.xlu1 %1824, %v795_v28  }
  0x24   :  { %800 = vperm.xlu0 %1823, %v794_v23   ;;  %v2957_v37 = vsel %vm2097_vm9, 4294967295, %v2956_v37  ;;  %v147_v39 = vfloor.f32 %v115_v31  ;;  %v131_v40 = vfloor.f32 %v99_v32  ;;  %1649 = vmatprep.subr.msk.mxu1 %vm2097_vm9, %v2932_v60  ;;  %vm2108_vm10 = vcmp.eq.f32.partialorder %v133_v33, %v1991_v21  ;;  %v1640_v31 = vld [vmem:[%s2871_s4 + $0x38] sm:$0xff] }
  0x25   :  { %v2958_v42 = vmov 0  ;;  %vm2113_vm11 = vcmp.eq.f32.partialorder %v148_v34, %v1991_v21  ;;  %v2960_v43 = vmov 0  ;;  %v146_v44 = vfloor.f32 %v114_v35  ;;  %1650 = vmatpush3.msk.msra.mxu1 %vm2108_vm10, %v2932_v60 }
  0x26   :  { %v2959_v42 = vsel %vm2108_vm10, 4294967295, %v2958_v42  ;;  %v2961_v43 = vsel %vm2113_vm11, 4294967295, %v2960_v43  ;;  %v130_v45 = vfloor.f32 %v98_v36  ;;  %vm2124_vm12 = vcmp.eq.f32.partialorder %v132_v38, %v1991_v21  ;;  %1651 = vmatprep.subr.msk.mxu1 %vm2113_vm11, %v2932_v60 }
  0x27   :  { %v2962_v47 = vmov 0  ;;  %vm2129_vm13 = vcmp.eq.f32.partialorder %v147_v39, %v1991_v21  ;;  %v2964_v48 = vmov 0  ;;  %vm2134_vm14 = vcmp.eq.f32.partialorder %v131_v40, %v1991_v21  ;;  %1652 = vmatpush3.msk.msra.mxu1 %vm2124_vm12, %v2932_v60  ;;  %815 = vperm.xlu1 %1824, %v797_v46  }
  0x28   :  { %v2963_v47 = vsel %vm2124_vm12, 4294967295, %v2962_v47  ;;  %v2965_v48 = vsel %vm2129_vm13, 4294967295, %v2964_v48  ;;  %v2966_v49 = vmov 0  ;;  %v46_v50 = vadd.s32 184, %v1982_v17  ;;  %810 = vperm.xlu0 %1823, %v796_v41   ;;  %1653 = vmatprep.subr.msk.mxu1 %vm2129_vm13, %v2932_v60 }
  0x29   :  { %v2967_v49 = vsel %vm2134_vm14, 4294967295, %v2966_v49  ;;  %vm2143_vm15 = vcmp.eq.f32.partialorder %v146_v44, %v1991_v21  ;;  %v2968_v51 = vmov 0  ;;  %vm2148_vm0 = vcmp.eq.f32.partialorder %v130_v45, %v1991_v21  ;;  %1654 = vmatpush3.msk.msra.mxu1 %vm2134_vm14, %v2932_v60 }
  0x2a   :  { %v2969_v51 = vsel %vm2143_vm15, 4294967295, %v2968_v51  ;;  %v2970_v52 = vmov 0  ;;  %v30_v53 = vadd.s32 56, %v1982_v17  ;;  %v45_v54 = vadd.s32 176, %v1982_v17  ;;  %1655 = vmatprep.subr.msk.mxu1 %vm2143_vm15, %v2932_v60 }
  0x2b   :  { %v2971_v52 = vsel %vm2148_vm0, 4294967295, %v2970_v52  ;;  %v78_v55 = vcvt.s32.f32 %v46_v50  ;;  %v29_v59 = vadd.s32 48, %v1982_v17  ;;  %v44_v0 = vadd.s32 168, %v1982_v17  ;;  %1656 = vmatpush3.msk.msra.mxu1 %vm2148_vm0, %v2932_v60  ;;  %1407 = vperm.xlu1 %1824, %v1638_v10  }
  0x2c   :  { %v28_v1 = vadd.s32 40, %v1982_v17  ;;  %v62_v6 = vcvt.s32.f32 %v30_v53  ;;  %v77_v7 = vcvt.s32.f32 %v45_v54  ;;  %v43_v8 = vadd.s32 160, %v1982_v17  ;;  %1402 = vperm.xlu0 %1823, %v1637_v5  }
  0x2d   :  { %v27_v9 = vadd.s32 32, %v1982_v17  ;;  %v113_v11 = vmul.f32 0.015625, %v78_v55  ;;  %v61_v12 = vcvt.s32.f32 %v29_v59  ;;  %v76_v13 = vcvt.s32.f32 %v44_v0 }
  0x2e   :  { %v60_v14 = vcvt.s32.f32 %v28_v1  ;;  %v97_v15 = vmul.f32 0.015625, %v62_v6  ;;  %v112_v16 = vmul.f32 0.015625, %v77_v7  ;;  %v75_v19 = vcvt.s32.f32 %v43_v8 }
  0x2f   :  { %v59_v20 = vcvt.s32.f32 %v27_v9  ;;  %v145_v22 = vfloor.f32 %v113_v11  ;;  %v96_v23 = vmul.f32 0.015625, %v61_v12  ;;  %v111_v24 = vmul.f32 0.015625, %v76_v13  ;;  %1417 = vperm.xlu1 %1824, %v1640_v31  }
  0x30   :  { %v95_v25 = vmul.f32 0.015625, %v60_v14  ;;  %v129_v27 = vfloor.f32 %v97_v15  ;;  %v144_v28 = vfloor.f32 %v112_v16  ;;  %v110_v29 = vmul.f32 0.015625, %v75_v19  ;;  %1412 = vperm.xlu0 %1823, %v1639_v26  }
  0x31   :  { %v94_v30 = vmul.f32 0.015625, %v59_v20  ;;  %vm2187_vm15 = vcmp.eq.f32.partialorder %v145_v22, %v1991_v21  ;;  %v2972_v32 = vmov 0  ;;  %v128_v33 = vfloor.f32 %v96_v23 }
  0x32   :  { %v2973_v32 = vsel %vm2187_vm15, 4294967295, %v2972_v32  ;;  %v143_v34 = vfloor.f32 %v111_v24  ;;  %v127_v35 = vfloor.f32 %v95_v25  ;;  %1657 = vmatprep.subr.msk.mxu1 %vm2187_vm15, %v2932_v60  ;;  %vm2195_vm0 = vcmp.eq.f32.partialorder %v129_v27, %v1991_v21 }
  0x33   :  { %v2974_v36 = vmov 0  ;;  %vm2200_vm14 = vcmp.eq.f32.partialorder %v144_v28, %v1991_v21  ;;  %v2976_v38 = vmov 0  ;;  %v142_v39 = vfloor.f32 %v110_v29  ;;  %1658 = vmatpush3.msk.msra.mxu1 %vm2195_vm0, %v2932_v60 }
  0x34   :  { %v2975_v36 = vsel %vm2195_vm0, 4294967295, %v2974_v36  ;;  %v2977_v38 = vsel %vm2200_vm14, 4294967295, %v2976_v38  ;;  %v126_v40 = vfloor.f32 %v94_v30  ;;  %vm2208_vm13 = vcmp.eq.f32.partialorder %v128_v33, %v1991_v21  ;;  %1659 = vmatprep.subr.msk.mxu1 %vm2200_vm14, %v2932_v60 }
  0x35   :  { %v2978_v41 = vmov 0  ;;  %vm2213_vm15 = vcmp.eq.f32.partialorder %v143_v34, %v1991_v21  ;;  %v2980_v44 = vmov 0  ;;  %v42_v45 = vadd.s32 152, %v1982_v17  ;;  %1660 = vmatpush3.msk.msra.mxu1 %vm2208_vm13, %v2932_v60 }
  0x36   :  { %v2979_v41 = vsel %vm2208_vm13, 4294967295, %v2978_v41  ;;  %v2981_v44 = vsel %vm2213_vm15, 4294967295, %v2980_v44  ;;  %vm2222_vm12 = vcmp.eq.f32.partialorder %v127_v35, %v1991_v21  ;;  %v2982_v46 = vmov 0  ;;  %1661 = vmatprep.subr.msk.mxu1 %vm2213_vm15, %v2932_v60 }
  0x37   :  { %v2983_v46 = vsel %vm2222_vm12, 4294967295, %v2982_v46  ;;  %v26_v50 = vadd.s32 24, %v1982_v17  ;;  %vm2231_vm0 = vcmp.eq.f32.partialorder %v142_v39, %v1991_v21  ;;  %v2984_v53 = vmov 0  ;;  %1662 = vmatpush3.msk.msra.mxu1 %vm2222_vm12, %v2932_v60 }
  0x38   :  { %v2985_v53 = vsel %vm2231_vm0, 4294967295, %v2984_v53  ;;  %v74_v54 = vcvt.s32.f32 %v42_v45  ;;  %vm2239_vm14 = vcmp.eq.f32.partialorder %v126_v40, %v1991_v21  ;;  %v2986_v55 = vmov 0  ;;  %1663 = vmatprep.subr.msk.mxu1 %vm2231_vm0, %v2932_v60 }
  0x39   :  { %v2987_v55 = vsel %vm2239_vm14, 4294967295, %v2986_v55  ;;  %v58_v59 = vcvt.s32.f32 %v26_v50  ;;  %1664 = vmatpush3.msk.msra.mxu1 %vm2239_vm14, %v2932_v60  ;;  %v2988_v7 = vmov 0  ;;  %v2990_v8 = vmov 0 }
  0x3a   :  { %v109_v0 = vmul.f32 0.015625, %v74_v54  ;;  %v41_v9 = vadd.s32 144, %v1982_v17  ;;  %v25_v10 = vadd.s32 16, %v1982_v17  ;;  %v40_v12 = vadd.s32 136, %v1982_v17 }
  0x3b   :  { %v93_v1 = vmul.f32 0.015625, %v58_v59  ;;  %v24_v14 = vadd.s32 8, %v1982_v17  ;;  %v39_v19 = vadd.s32 128, %v1982_v17  ;;  %v55_v28 = vcvt.s32.f32 %v1982_v17 }
  0x3c   :  { %v141_v5 = vfloor.f32 %v109_v0  ;;  %v73_v11 = vcvt.s32.f32 %v41_v9  ;;  %v57_v13 = vcvt.s32.f32 %v25_v10  ;;  %v72_v16 = vcvt.s32.f32 %v40_v12 }
  0x3d   :  { %v125_v6 = vfloor.f32 %v93_v1  ;;  %v56_v22 = vcvt.s32.f32 %v24_v14  ;;  %v71_v25 = vcvt.s32.f32 %v39_v19  ;;  %v2992_v29 = vmov 0 }
  0x3e   :  { %vm2253_vm15 = vcmp.eq.f32.partialorder %v141_v5, %v1991_v21  ;;  %v108_v15 = vmul.f32 0.015625, %v73_v11  ;;  %v92_v20 = vmul.f32 0.015625, %v57_v13  ;;  %v107_v24 = vmul.f32 0.015625, %v72_v16 }
  0x3f   :  { %v2989_v7 = vsel %vm2253_vm15, 4294967295, %v2988_v7  ;;  %1665 = vmatprep.subr.msk.mxu1 %vm2253_vm15, %v2932_v60  ;;  %vm2261_vm12 = vcmp.eq.f32.partialorder %v125_v6, %v1991_v21  ;;  %v91_v27 = vmul.f32 0.015625, %v56_v22  ;;  %v106_v31 = vmul.f32 0.015625, %v71_v25 }
  0x40   :  { %v2991_v8 = vsel %vm2261_vm12, 4294967295, %v2990_v8  ;;  %1666 = vmatpush3.msk.msra.mxu1 %vm2261_vm12, %v2932_v60  ;;  %v140_v23 = vfloor.f32 %v108_v15  ;;  %v124_v26 = vfloor.f32 %v92_v20  ;;  %v139_v30 = vfloor.f32 %v107_v24 }
  0x41   :  { %v2994_v33 = vmov 0  ;;  %v123_v34 = vfloor.f32 %v91_v27  ;;  %v90_v35 = vmul.f32 0.015625, %v55_v28  ;;  %v2996_v17 = vmov 0 }
  0x42   :  { %vm2275_vm12 = vcmp.eq.f32.partialorder %v140_v23, %v1991_v21  ;;  %vm2283_vm15 = vcmp.eq.f32.partialorder %v124_v26, %v1991_v21  ;;  %vm2291_vm14 = vcmp.eq.f32.partialorder %v139_v30, %v1991_v21  ;;  %v138_v39 = vfloor.f32 %v106_v31 }
  0x43   :  { %v2993_v29 = vsel %vm2275_vm12, 4294967295, %v2992_v29  ;;  %1667 = vmatprep.subr.msk.mxu1 %vm2275_vm12, %v2932_v60  ;;  %v2995_v33 = vsel %vm2283_vm15, 4294967295, %v2994_v33  ;;  %v2997_v17 = vsel %vm2291_vm14, 4294967295, %v2996_v17  ;;  %vm2299_vm12 = vcmp.eq.f32.partialorder %v123_v34, %v1991_v21 }
  0x44   :  { %1668 = vmatpush3.msk.msra.mxu1 %vm2283_vm15, %v2932_v60  ;;  %v2998_v40 = vmov 0  ;;  %v122_v45 = vfloor.f32 %v90_v35  ;;  %vm2307_vm15 = vcmp.eq.f32.partialorder %v138_v39, %v1991_v21  ;;  %v3000_v50 = vmov 0 }
  0x45   :  { %1669 = vmatprep.subr.msk.mxu1 %vm2291_vm14, %v2932_v60  ;;  %v2999_v40 = vsel %vm2299_vm12, 4294967295, %v2998_v40  ;;  %v3001_v50 = vsel %vm2307_vm15, 4294967295, %v3000_v50  ;;  %v3002_v54 = vmov 0  ;;  %v218_v59 = vadd.s32 128, %v1984_v18 }
  0x46   :  { %1670 = vmatpush3.msk.msra.mxu1 %vm2299_vm12, %v2932_v60  ;;  %vm2315_vm14 = vcmp.eq.f32.partialorder %v122_v45, %v1991_v21  ;;  %v220_v0 = vmul.f32 0.015625, %v1991_v21  ;;  %v2934_v1 = vmov 0.0   ;;  %vm2912_vm12 = vcmask 1043456  }
  0x47   :  { %1671 = vmatprep.subr.msk.mxu1 %vm2307_vm15, %v2932_v60  ;;  %v3003_v54 = vsel %vm2315_vm14, 4294967295, %v3002_v54  ;;  %519 = vmatprep.mubr.f32.mxu0 %v2934_v1  ;;  %v219_v5 = vcvt.s32.f32 %v218_v59 }
  0x48   :  { %3004 = vst [vmem:[#allocation5_spill] sm:$0xff] %v3003_v54  ;;  %1672 = vmatpush3.msk.msra.mxu1 %vm2315_vm14, %v2932_v60  ;;  %v222_v6 = vfloor.f32 %v220_v0 }
  0x49   :  { %v221_v9 = vmul.f32 0.015625, %v219_v5 }
  0x4a   :  { %vm224_vm15 = vcmp.eq.f32.partialorder %v222_v6, %v55_v28 }
  0x4b   :  { %v223_v10 = vfloor.f32 %v221_v9  ;;  %v2326_v11 = vsel %vm224_vm15, 0.015625, %v2934_v1  ;;  %vm3005_vm15 = vnez %v2963_v47 }
  0x4d   :  { %vm225_vm0 = vcmp.eq.f32.partialorder %v223_v10, %v55_v28 }
  0x4e   :  { %v2329_v12 = vsel %vm225_vm0, 0.015625, %v2934_v1  ;;  %vm2919_vm0 = vcmask 31744  }
  0x4f   :  { %1493 = vmatprep.subr.msk.mxu0 %vm2912_vm12, %v2329_v12  ;;  %1531 = vmatprep.subr.msk.mxu1 %vm2912_vm12, %v2329_v12 }
  0x50   :  { %1494 = vmatpush1.msk.msra.mxu0 %vm2912_vm12, %v2326_v11 }
  0x51   :  { %1685 = vmatprep.subr.msk.mxu0 %vm2013_vm1, %v2932_v60 }
  0x7e   :  { %v253_v23 = vpop.permute.xlu1 %252 }
  0x7f   :  { %v243_v18 = vpop.permute.xlu0 %242 }
  0x82   :  { %v258_v31 = vpop.permute.xlu1 %257 }
  0x83   :  { %v248_v19 = vpop.permute.xlu0 %247 }
  0xca   :  { %v331_v21 = vpop.f32.mrf.mxu0 }
  0xcb   :  { %v2342_v15 = vadd.f32 %v331_v21, %v243_v18 }
  0xcc   :  { %v333_v13 = vpop.f32.mrf.mxu0 }
  0xcd   :  { %v2340_v14 = vadd.f32 %v333_v13, %v243_v18 }
  0xce   :  { %v335_v16 = vpop.f32.mrf.mxu0 }
  0xcf   :  { %414 = vmatprep.mubr.f32.mxu1 %v2340_v14  ;;  %v2350_v24 = vadd.f32 %v335_v16, %v248_v19 }
  0xd0   :  { %v337_v20 = vpop.f32.mrf.mxu0  ;;  %415 = vmatmul.mubr.f32.vlgmr.msra.gmra.mxu1 %v2342_v15 }
  0xd1   :  { %v2346_v22 = vadd.f32 %v337_v20, %v248_v19  ;;  %1532 = vmatpush1.msk.msra.mxu1 %vm2912_vm12, %v2326_v11  ;;  %vm3006_vm12 = vnez %v2965_v48 }
  0xd2   :  { %v341_v25 = vpop.f32.mrf.mxu0 }
  0xd3   :  { %419 = vmatprep.mubr.f32.mxu1 %v2346_v22  ;;  %v2356_v28 = vadd.f32 %v341_v25, %v253_v23 }
  0xd4   :  { %v343_v26 = vpop.f32.mrf.mxu0  ;;  %420 = vmatmul.mubr.f32.gmra.mxu1 %v2350_v24 }
  0xd5   :  { %v2354_v27 = vadd.f32 %v343_v26, %v253_v23 }
  0xd6   :  { %v345_v30 = vpop.f32.mrf.mxu0 }
  0xd7   :  { %424 = vmatprep.mubr.f32.mxu1 %v2354_v27  ;;  %v2362_v39 = vadd.f32 %v345_v30, %v258_v31 }
  0xd8   :  { %v347_v34 = vpop.f32.mrf.mxu0  ;;  %425 = vmatmul.mubr.f32.gmra.mxu1 %v2356_v28 }
  0xd9   :  { %v2360_v35 = vadd.f32 %v347_v34, %v258_v31 }
  0xdb   :  { %429 = vmatprep.mubr.f32.mxu1 %v2360_v35 }
  0xdc   :  { %430 = vmatmul.mubr.f32.gmra.mxu1 %v2362_v39 }
  0xdd   :  { %721 = vmatprep.mubr.f32.mxu1 %v2934_v1 }
 0x190   :  { %v1673_v45 = vpop.f32.mrf.mxu1 }
 0x192   :  { %v1674_v59 = vpop.f32.mrf.mxu1 }
 0x193   :  { %v1675_v0 = vadd.f32 %v1674_v59, %v1673_v45 }
 0x194   :  { %v1676_v5 = vpop.f32.mrf.mxu1 }
 0x195   :  { %1495 = vmatmul.mubr.msk.f32.vlgmr.msra.gmra.mxu0 %vm2919_vm0, %v1675_v0 }
 0x196   :  { %v1677_v6 = vpop.f32.mrf.mxu1  ;;  %525 = vmatprep.mubr.f32.mxu0 %v2934_v1  ;;  %1686 = vmatpush3.msk.msra.mxu0 %vm2018_vm2, %v2932_v60 }
 0x197   :  { %v1678_v9 = vadd.f32 %v1677_v6, %v1676_v5  ;;  %1687 = vmatprep.subr.msk.mxu0 %vm2023_vm3, %v2932_v60 }
 0x198   :  { %v1679_v10 = vpop.f32.mrf.mxu1  ;;  %1688 = vmatpush3.msk.msra.mxu0 %vm2031_vm4, %v2932_v60 }
 0x199   :  { %1496 = vmatmul.mubr.msk.f32.gmra.mxu0 %vm2919_vm0, %v1678_v9  ;;  %1689 = vmatprep.subr.msk.mxu0 %vm2036_vm5, %v2932_v60 }
 0x19a   :  { %v1680_v18 = vpop.f32.mrf.mxu1  ;;  %531 = vmatprep.mubr.f32.mxu0 %v2934_v1  ;;  %1690 = vmatpush3.msk.msra.mxu0 %vm2041_vm6, %v2932_v60 }
 0x19b   :  { %v1681_v21 = vadd.f32 %v1680_v18, %v1679_v10  ;;  %1691 = vmatprep.subr.msk.mxu0 %vm2053_vm7, %v2932_v60 }
 0x19c   :  { %v1682_v13 = vpop.f32.mrf.mxu1  ;;  %1692 = vmatpush3.msk.msra.mxu0 %vm2058_vm8, %v2932_v60 }
 0x19d   :  { %1497 = vmatmul.mubr.msk.f32.gmra.mxu0 %vm2919_vm0, %v1681_v21  ;;  %1693 = vmatprep.subr.msk.mxu0 %vm2097_vm9, %v2932_v60  ;;  %vm3007_vm9 = vnez %v2967_v49 }
 0x19e   :  { %v1683_v16 = vpop.f32.mrf.mxu1  ;;  %537 = vmatprep.mubr.f32.mxu0 %v2934_v1  ;;  %1694 = vmatpush3.msk.msra.mxu0 %vm2108_vm10, %v2932_v60  ;;  %vm3008_vm10 = vnez %v2969_v51 }
 0x19f   :  { %v1684_v19 = vadd.f32 %v1683_v16, %v1682_v13  ;;  %1695 = vmatprep.subr.msk.mxu0 %vm2113_vm11, %v2932_v60  ;;  %vm3009_vm11 = vnez %v2971_v52  ;;  %v1835_v13 = vld [vmem:[%s2867_s0 + $0x34] ss:$8 sps:$4 sm:$0xff]  }
 0x1a0   :  { %1696 = vmatpush3.msk.msra.mxu0 %vm3005_vm15, %v2932_v60  ;;  %vm3010_vm15 = vnez %v2973_v32  ;;  %917 = vmatprep.subr.bf16.mxu1 %v1835_v13 }
 0x1a1   :  { %1498 = vmatmul.mubr.msk.f32.gmra.mxu0 %vm2919_vm0, %v1684_v19  ;;  %1697 = vmatprep.subr.msk.mxu0 %vm3006_vm12, %v2932_v60  ;;  %vm3011_vm0 = vnez %v2975_v36  ;;  %vm3012_vm12 = vnez %v2977_v38 }
 0x1a2   :  { %1698 = vmatpush3.msk.msra.mxu0 %vm3007_vm9, %v2932_v60 }
 0x1a3   :  { %1699 = vmatprep.subr.msk.mxu0 %vm3008_vm10, %v2932_v60  ;;  %vm3013_vm10 = vnez %v2981_v44 }
 0x1a4   :  { %1700 = vmatpush3.msk.msra.mxu0 %vm3009_vm11, %v2932_v60  ;;  %vm3014_vm11 = vnez %v2983_v46 }
 0x1a5   :  { %1701 = vmatprep.subr.msk.mxu0 %vm3010_vm15, %v2932_v60  ;;  %vm3015_vm15 = vnez %v2985_v53 }
 0x1a6   :  { %1702 = vmatpush3.msk.msra.mxu0 %vm3011_vm0, %v2932_v60  ;;  %vm3016_vm0 = vnez %v2987_v55 }
 0x1a7   :  { %1703 = vmatprep.subr.msk.mxu0 %vm3012_vm12, %v2932_v60  ;;  %vm3017_vm12 = vnez %v2989_v7 }
 0x1a8   :  { %1704 = vmatpush3.msk.msra.mxu0 %vm2208_vm13, %v2932_v60  ;;  %vm3018_vm13 = vnez %v2991_v8 }
 0x1a9   :  { %1705 = vmatprep.subr.msk.mxu0 %vm3013_vm10, %v2932_v60  ;;  %vm3019_vm10 = vnez %v2993_v29 }
 0x1aa   :  { %1706 = vmatpush3.msk.msra.mxu0 %vm3014_vm11, %v2932_v60  ;;  %vm3020_vm11 = vnez %v2995_v33 }
 0x1ab   :  { %1707 = vmatprep.subr.msk.mxu0 %vm3015_vm15, %v2932_v60  ;;  %vm3021_vm15 = vnez %v2997_v17 }
 0x1ac   :  { %1708 = vmatpush3.msk.msra.mxu0 %vm3016_vm0, %v2932_v60  ;;  %vm3022_vm0 = vnez %v2999_v40 }
 0x1ad   :  { %1709 = vmatprep.subr.msk.mxu0 %vm3017_vm12, %v2932_v60  ;;  %vm3023_vm12 = vnez %v3001_v50 }
 0x1ae   :  { %1710 = vmatpush3.msk.msra.mxu0 %vm3018_vm13, %v2932_v60 }
 0x1af   :  { %1711 = vmatprep.subr.msk.mxu0 %vm3019_vm10, %v2932_v60 }
 0x1b0   :  { %1712 = vmatpush3.msk.msra.mxu0 %vm3020_vm11, %v2932_v60 }
 0x1b1   :  { %1713 = vmatprep.subr.msk.mxu0 %vm3021_vm15, %v2932_v60 }
 0x1b2   :  { %1714 = vmatpush3.msk.msra.mxu0 %vm3022_vm0, %v2932_v60 }
 0x1b3   :  { %1715 = vmatprep.subr.msk.mxu0 %vm3023_vm12, %v2932_v60 }
 0x1b4   :  { %1716 = vmatpush3.msk.msra.mxu0 %vm2315_vm14, %v2932_v60 }
 0x1b5   :  { %1729 = vmatprep.subr.msk.mxu0 %vm2013_vm1, %v2932_v60 }
 0x255   :  { %v521_v20 = vpop.f32.mrf.mxu0 }
 0x256   :  { %v2471_v23 = vsub.f32 %v2342_v15, %v521_v20  ;;  %v1833_v20 = vld [vmem:[%s2867_s0 + $0x30] ss:$8 sps:$4 sm:$0xff]  }
 0x257   :  { %v523_v25 = vpop.f32.mrf.mxu0 }
 0x258   :  { %v2474_v26 = vsub.f32 %v2340_v14, %v523_v25  ;;  %v552_v34 = vmul.f32 %v2471_v23, %v2471_v23 }
 0x259   :  { %v527_v30 = vpop.f32.mrf.mxu0 }
 0x25a   :  { %v553_v31 = vmul.f32 %v2474_v26, %v2474_v26  ;;  %v2481_v45 = vsub.f32 %v2350_v24, %v527_v30  ;;  %v1838_v30 = vld [vmem:[%s2867_s0 + $0x24] ss:$8 sps:$4 sm:$0xff]  }
 0x25b   :  { %v529_v59 = vpop.f32.mrf.mxu0 }
 0x25c   :  { %v2484_v0 = vsub.f32 %v2346_v22, %v529_v59  ;;  %624 = vmatprep.mubr.f32.mxu0 %v553_v31  ;;  %v554_v5 = vmul.f32 %v2481_v45, %v2481_v45  ;;  %v1836_v59 = vld [vmem:[%s2867_s0 + $0x20] ss:$8 sps:$4 sm:$0xff]  }
 0x25d   :  { %v533_v15 = vpop.f32.mrf.mxu0  ;;  %625 = vmatmul.mubr.f32.vlgmr.msra.gmra.mxu0 %v552_v34 }
 0x25e   :  { %v555_v14 = vmul.f32 %v2484_v0, %v2484_v0  ;;  %1730 = vmatpush3.msk.msra.mxu0 %vm2018_vm2, %v2932_v60  ;;  %v2494_v24 = vsub.f32 %v2356_v28, %v533_v15 }
 0x25f   :  { %v535_v6 = vpop.f32.mrf.mxu0  ;;  %1731 = vmatprep.subr.msk.mxu0 %vm2023_vm3, %v2932_v60 }
 0x260   :  { %v2500_v22 = vsub.f32 %v2354_v27, %v535_v6  ;;  %629 = vmatprep.mubr.f32.mxu0 %v555_v14  ;;  %1732 = vmatpush3.msk.msra.mxu0 %vm2031_vm4, %v2932_v60  ;;  %v556_v27 = vmul.f32 %v2494_v24, %v2494_v24  ;;  %vm3032_vm4 = vnez %v2975_v36 }
 0x261   :  { %v539_v9 = vpop.f32.mrf.mxu0  ;;  %630 = vmatmul.mubr.f32.gmra.mxu0 %v554_v5  ;;  %1733 = vmatprep.subr.msk.mxu0 %vm2036_vm5, %v2932_v60  ;;  %vm3025_vm5 = vnez %v2959_v42 }
 0x262   :  { %v557_v28 = vmul.f32 %v2500_v22, %v2500_v22  ;;  %1734 = vmatpush3.msk.msra.mxu0 %vm2041_vm6, %v2932_v60  ;;  %v2516_v10 = vsub.f32 %v2362_v39, %v539_v9  ;;  %vm3024_vm6 = vnez %v2957_v37 }
 0x263   :  { %v541_v18 = vpop.f32.mrf.mxu0  ;;  %1735 = vmatprep.subr.msk.mxu0 %vm2053_vm7, %v2932_v60  ;;  %vm3026_vm7 = vnez %v2961_v43 }
 0x264   :  { %v2522_v21 = vsub.f32 %v2360_v35, %v541_v18  ;;  %634 = vmatprep.mubr.f32.mxu0 %v557_v28  ;;  %1736 = vmatpush3.msk.msra.mxu0 %vm2058_vm8, %v2932_v60  ;;  %v558_v35 = vmul.f32 %v2516_v10, %v2516_v10  ;;  %vm3027_vm8 = vnez %v2963_v47  ;;  %v1839_v18 = vld [vmem:[%s2868_s1 + $0x10] sm:$0xff]  }
 0x265   :  { %635 = vmatmul.mubr.f32.gmra.mxu0 %v556_v27  ;;  %1737 = vmatprep.subr.msk.mxu0 %vm3024_vm6, %v2932_v60  ;;  %vm3028_vm6 = vnez %v2965_v48 }
 0x266   :  { %v559_v39 = vmul.f32 %v2522_v21, %v2522_v21  ;;  %1738 = vmatpush3.msk.msra.mxu0 %vm3025_vm5, %v2932_v60  ;;  %vm3029_vm5 = vnez %v2969_v51 }
 0x267   :  { %1739 = vmatprep.subr.msk.mxu0 %vm3026_vm7, %v2932_v60  ;;  %vm3030_vm7 = vnez %v2971_v52 }
 0x268   :  { %639 = vmatprep.mubr.f32.mxu0 %v559_v39  ;;  %1740 = vmatpush3.msk.msra.mxu0 %vm3027_vm8, %v2932_v60  ;;  %vm3031_vm8 = vnez %v2973_v32  ;;  %v852_v39 = vpop.permute.xlu0 %851 }
 0x269   :  { %640 = vmatmul.mubr.f32.gmra.mxu0 %v558_v35  ;;  %1741 = vmatprep.subr.msk.mxu0 %vm3028_vm6, %v2932_v60  ;;  %vm3033_vm6 = vnez %v2977_v38  ;;  %v857_v35 = vpop.permute.xlu1 %856 }
 0x26a   :  { %1742 = vmatpush3.msk.msra.mxu0 %vm3007_vm9, %v2932_v60  ;;  %vm3034_vm9 = vnez %v2979_v41 }
 0x26b   :  { %1743 = vmatprep.subr.msk.mxu0 %vm3029_vm5, %v2932_v60  ;;  %vm3035_vm5 = vnez %v2981_v44 }
 0x26c   :  { %1744 = vmatpush3.msk.msra.mxu0 %vm3030_vm7, %v2932_v60  ;;  %vm3036_vm7 = vnez %v2983_v46  ;;  %v2642_v13 = vpop.permute.xlu0 %861 }
 0x26d   :  { %1745 = vmatprep.subr.msk.mxu0 %vm3031_vm8, %v2932_v60  ;;  %vm3037_vm8 = vnez %v2985_v53 }
 0x26e   :  { %1746 = vmatpush3.msk.msra.mxu0 %vm3032_vm4, %v2932_v60  ;;  %vm3038_vm4 = vnez %v2987_v55 }
 0x26f   :  { %1747 = vmatprep.subr.msk.mxu0 %vm3033_vm6, %v2932_v60  ;;  %vm3039_vm6 = vnez %v2989_v7 }
 0x270   :  { %1748 = vmatpush3.msk.msra.mxu0 %vm3034_vm9, %v2932_v60 }
 0x271   :  { %1749 = vmatprep.subr.msk.mxu0 %vm3035_vm5, %v2932_v60 }
 0x272   :  { %1750 = vmatpush3.msk.msra.mxu0 %vm3036_vm7, %v2932_v60 }
 0x273   :  { %1751 = vmatprep.subr.msk.mxu0 %vm3037_vm8, %v2932_v60 }
 0x274   :  { %1752 = vmatpush3.msk.msra.mxu0 %vm3038_vm4, %v2932_v60 }
 0x275   :  { %1753 = vmatprep.subr.msk.mxu0 %vm3039_vm6, %v2932_v60 }
 0x276   :  { %1754 = vmatpush3.msk.msra.mxu0 %vm3018_vm13, %v2932_v60 }
 0x277   :  { %1755 = vmatprep.subr.msk.mxu0 %vm3019_vm10, %v2932_v60  ;;  %vm3040_vm10 = vcmask 1043456  }
 0x278   :  { %1756 = vmatpush3.msk.msra.mxu0 %vm3020_vm11, %v2932_v60 }
 0x279   :  { %1757 = vmatprep.subr.msk.mxu0 %vm3021_vm15, %v2932_v60 }
 0x27a   :  { %1758 = vmatpush3.msk.msra.mxu0 %vm3022_vm0, %v2932_v60 }
 0x27b   :  { %1759 = vmatprep.subr.msk.mxu0 %vm3023_vm12, %v2932_v60 }
 0x27c   :  { %1760 = vmatpush3.msk.msra.mxu0 %vm2315_vm14, %v2932_v60  ;;  %vm3041_vm14 = vcmask 31744  }
 0x27d   :  { %1627 = vmatprep.subr.msk.mxu0 %vm3040_vm10, %v2329_v12  ;;  %vm3042_vm10 = vmmov %vm3041_vm14 }
 0x27e   :  { %vm3044_vm12 = vmmov %vm3042_vm10 }
 0x27f   :  { %vm3045_vm0 = vmmov %vm3042_vm10 }
 0x31d   :  { %v1717_v16 = vpop.f32.mrf.mxu0 }
 0x31f   :  { %v1718_v19 = vpop.f32.mrf.mxu0 }
 0x320   :  { %v1719_v25 = vadd.f32 %v1718_v19, %v1717_v16  ;;  %v769_v16 = vpop.permute.xlu0 %768 }
 0x321   :  { %v1720_v31 = vpop.f32.mrf.mxu0 }
 0x322   :  { %1533 = vmatmul.mubr.msk.f32.vlgmr.msra.gmra.mxu1 %vm3041_vm14, %v1719_v25  ;;  %vm3043_vm14 = vcmask 1043456  }
 0x323   :  { %918 = vmatpush1.bf16.msra.mxu1 %v1833_v20  ;;  %v1721_v34 = vpop.f32.mrf.mxu0  ;;  %727 = vmatprep.mubr.f32.mxu1 %v2934_v1 }
 0x324   :  { %v1722_v15 = vadd.f32 %v1721_v34, %v1720_v31  ;;  %919 = vmatprep.subr.bf16.mxu1 %v1838_v30  ;;  %v2646_v56 = vpop.permute.xlu0 %778 }
 0x325   :  { %v1723_v14 = vpop.f32.mrf.mxu0 }
 0x326   :  { %1534 = vmatmul.mubr.msk.f32.gmra.mxu1 %vm3042_vm10, %v1722_v15  ;;  %vm3046_vm10 = vcmask 261120  }
 0x327   :  { %v1724_v5 = vpop.f32.mrf.mxu0  ;;  %733 = vmatprep.mubr.f32.mxu1 %v2934_v1  ;;  %920 = vmatpush1.bf16.msra.mxu1 %v1836_v59 }
 0x328   :  { %v1725_v6 = vadd.f32 %v1724_v5, %v1723_v14  ;;  %1589 = vmatprep.subr.msk.mxu1 %vm3043_vm14, %v2329_v12  ;;  %v1840_v12 = vld [vmem:[%s2868_s1 + $0x18] sm:$0xff]   ;;  %s1898_s1 = smov [#allocation2]  }
 0x329   :  { %v1726_v9 = vpop.f32.mrf.mxu0  ;;  %s1442_s10 = sshll.u32 %s1898_s1, 4  ;;  %s1443_s10 = int_to_ptr.vmem [resolvable:$true] %s1442_s10 }
 0x32a   :  { %1535 = vmatmul.mubr.msk.f32.gmra.mxu1 %vm3044_vm12, %v1725_v6  ;;  %vm3047_vm12 = vmmov %vm3046_vm10  ;;  %v2650_v6 = vpop.permute.xlu0 %1369  ;;  %s1873_s3 = scalar_lea.vmem %s1443_s10, 2048  ;;  %p1878_p1 = scmp.lt.s32.totalorder %s1443_s10, %s1443_s10 }
 0x32b   :  { %v1727_v28 = vpop.f32.mrf.mxu0  ;;  %739 = vmatprep.mubr.f32.mxu1 %v2934_v1  ;;  %3048 = vst [vmem:[#allocation6_spill] sm:$0xff] %v2650_v6  ;;  %p1874_p0 = scmp.ne.s32.totalorder %s1443_s10, %s1873_s3  ;;  %p1879_p2 = scmp.lt.s32.totalorder %s1873_s3, %s1873_s3 }
 0x32c   :  { %v1728_v27 = vadd.f32 %v1727_v28, %v1726_v9 }
 0x32d   :  { %p1880_p3 = por %p1879_p2, %p1878_p1 }
 0x32e   :  { %1536 = vmatmul.mubr.msk.f32.gmra.mxu1 %vm3045_vm0, %v1728_v27 }
 0x32f   :  { %937 = vmatprep.mubr.bf16.mxu1 %v1895_v2  ;;  %p1881_p4 = pnand %p1880_p3, %p1874_p0 }
 0x332   :  { %1555 = vmatmul.mubr.msk.bf16.vlgmr.msra.gmra.mxu1 %vm3046_vm10, %v1839_v18  ;;  %vm3054_vm10 = vnez %v2947_v61 }
 0x333   :  { %947 = vmatprep.mubr.bf16.mxu1 %v1895_v2  ;;  %1590 = vmatpush1.msk.msra.mxu1 %vm3043_vm14, %v2326_v11  ;;  %v2644_v2 = vpop.permute.xlu1 %866 }
 0x334   :  { %1773 = vmatprep.subr.msk.mxu1 %vm2013_vm1, %v2932_v60  ;;  %vm3051_vm1 = vmmov %vm3043_vm14 }
 0x335   :  { %vm3055_vm14 = vmmov %vm3045_vm0 }
 0x337   :  { %v774_v19 = vpop.permute.xlu1 %773 }
 0x33a   :  { %1556 = vmatmul.mubr.msk.bf16.gmra.mxu1 %vm3047_vm12, %v1840_v12  ;;  %vm3056_vm12 = vnez %v2949_v62 }
 0x33b   :  { %1119 = vmatprep.mubr.f32.mxu1 %v2934_v1  ;;  %v2648_v15 = vpop.permute.xlu1 %783 }
 0x33f   :  { %v2652_v12 = vpop.permute.xlu1 %1374 }
 0x340   :  { %3049 = vst [vmem:[#allocation7_spill] sm:$0xff] %v2652_v12 }
 0x3e2   :  { %v723_v20 = vpop.f32.mrf.mxu1 }
 0x3e3   :  { %v724_v25 = vadd.f32 1e-05, %v723_v20 }
 0x3e4   :  { %v725_v30 = vpop.f32.mrf.mxu1 }
 0x3e5   :  { %1841 = vrsqrt.f32 %v724_v25  ;;  %v726_v31 = vadd.f32 1e-05, %v725_v30  ;;  %v2654_v30 = vpop.permute.xlu0 %1379 }
 0x3e6   :  { %v729_v34 = vpop.f32.mrf.mxu1  ;;  %3050 = vst [vmem:[#allocation8_spill] sm:$0xff] %v2654_v30 }
 0x3e7   :  { %1843 = vrsqrt.f32 %v726_v31  ;;  %v730_v59 = vadd.f32 1e-05, %v729_v34 }
 0x3e8   :  { %v731_v14 = vpop.f32.mrf.mxu1 }
 0x3e9   :  { %1845 = vrsqrt.f32 %v730_v59  ;;  %v732_v5 = vadd.f32 1e-05, %v731_v14 }
 0x3ea   :  { %v735_v9 = vpop.f32.mrf.mxu1 }
 0x3eb   :  { %1847 = vrsqrt.f32 %v732_v5  ;;  %v736_v28 = vadd.f32 1e-05, %v735_v9  ;;  %v2657_v9 = vpop.permute.xlu1 %1384 }
 0x3ec   :  { %v737_v27 = vpop.f32.mrf.mxu1 }
 0x3ed   :  { %1849 = vrsqrt.f32 %v736_v28  ;;  %v738_v18 = vadd.f32 1e-05, %v737_v27 }
 0x3ee   :  { %v741_v20 = vpop.f32.mrf.mxu1 }
 0x3ef   :  { %1851 = vrsqrt.f32 %v738_v18  ;;  %v742_v25 = vadd.f32 1e-05, %v741_v20  ;;  %v801_v20 = vpop.permute.xlu0 %800 }
 0x3f0   :  { %v743_v31 = vpop.f32.mrf.mxu1 }
 0x3f1   :  { %1853 = vrsqrt.f32 %v742_v25  ;;  %v744_v34 = vadd.f32 1e-05, %v743_v31 }
 0x3f2   :  { %v1842_v59 = vpop.eup %1841  ;;  %v939_v14 = vpop.f32.mrf.mxu1 }
 0x3f3   :  { %v754_v60 = vmul.f32 %v1842_v59, %v2471_v23  ;;  %1855 = vrsqrt.f32 %v744_v34  ;;  %v2662_v30 = vadd.f32 %v939_v14, %v852_v39 }
 0x3f4   :  { %v1844_v5 = vpop.eup %1843  ;;  %v941_v28 = vpop.f32.mrf.mxu1 }
 0x3f5   :  { %v786_v27 = vmul.f32 %v769_v16, %v754_v60  ;;  %v755_v1 = vmul.f32 %v1844_v5, %v2474_v26  ;;  %v2660_v12 = vadd.f32 %v941_v28, %v852_v39 }
 0x3f6   :  { %v1846_v18 = vpop.eup %1845  ;;  %v943_v25 = vpop.f32.mrf.mxu1 }
 0x3f7   :  { %v818_v31 = vadd.f32 %v801_v20, %v786_v27  ;;  %v787_v6 = vmul.f32 %v769_v16, %v755_v1  ;;  %v756_v54 = vmul.f32 %v1846_v18, %v2481_v45  ;;  %1022 = vmatprep.mubr.f32.mxu0 %v2660_v12  ;;  %v806_v1 = vpop.permute.xlu1 %805  ;;  %v2672_v16 = vadd.f32 %v943_v25, %v857_v35  ;;  %v811_v25 = vpop.permute.xlu0 %810 }
 0x3f8   :  { %v1848_v23 = vpop.eup %1847  ;;  %v945_v34 = vpop.f32.mrf.mxu1  ;;  %1023 = vmatmul.mubr.f32.vlgmr.msra.gmra.mxu0 %v2662_v30 }
 0x3f9   :  { %826 = vst [vmem:[#allocation2] sm:$0xff] %v818_v31  ;;  %v819_v60 = vadd.f32 %v801_v20, %v787_v6  ;;  %v788_v26 = vmul.f32 %v774_v19, %v756_v54  ;;  %v757_v59 = vmul.f32 %v1848_v23, %v2484_v0  ;;  %v2668_v5 = vadd.f32 %v945_v34, %v857_v35 }
 0x3fa   :  { %1628 = vmatpush1.msk.msra.mxu0 %vm3051_vm1, %v2326_v11  ;;  %v1850_v39 = vpop.eup %1849  ;;  %v949_v45 = vpop.f32.mrf.mxu1  ;;  %vm3059_vm1 = vnez %v2955_v4 }
 0x3fb   :  { %827 = vst [vmem:[#allocation2 + $0x8] sm:$0xff] %v819_v60  ;;  %v820_v14 = vadd.f32 %v806_v1, %v788_v26  ;;  %v789_v28 = vmul.f32 %v774_v19, %v757_v59  ;;  %v758_v27 = vmul.f32 %v1850_v39, %v2494_v24  ;;  %1027 = vmatprep.mubr.f32.mxu0 %v2668_v5 }
 0x3fc   :  { %v1852_v54 = vpop.eup %1851  ;;  %v951_v6 = vpop.f32.mrf.mxu1  ;;  %1028 = vmatmul.mubr.f32.gmra.mxu0 %v2672_v16  ;;  %v2683_v19 = vadd.f32 %v949_v45, %v2642_v13 }
 0x3fd   :  { %828 = vst [vmem:[#allocation2 + $0x10] sm:$0xff] %v820_v14  ;;  %v821_v0 = vadd.f32 %v806_v1, %v789_v28  ;;  %v790_v11 = vmul.f32 %v2646_v56, %v758_v27  ;;  %v759_v18 = vmul.f32 %v1852_v54, %v2500_v22  ;;  %v2680_v35 = vadd.f32 %v951_v6, %v2642_v13  ;;  %v816_v1 = vpop.permute.xlu1 %815 }
 0x3fe   :  { %v1854_v20 = vpop.eup %1853  ;;  %v953_v24 = vpop.f32.mrf.mxu1  ;;  %v3052_v28 = vmov 0.0  }
 0x3ff   :  { %829 = vst [vmem:[#allocation2 + $0x18] sm:$0xff] %v821_v0  ;;  %v822_v31 = vadd.f32 %v811_v25, %v790_v11  ;;  %v791_v23 = vmul.f32 %v2646_v56, %v759_v18  ;;  %v760_v34 = vmul.f32 %v1854_v20, %v2516_v10  ;;  %1032 = vmatprep.mubr.f32.mxu0 %v2680_v35  ;;  %v3053_v0 = vmov 1.0  }
 0x400   :  { %v1856_v60 = vpop.eup %1855  ;;  %v955_v26 = vpop.f32.mrf.mxu1  ;;  %1033 = vmatmul.mubr.f32.gmra.mxu0 %v2683_v19  ;;  %v2695_v56 = vadd.f32 %v953_v24, %v2644_v2 }
 0x401   :  { %830 = vst [vmem:[#allocation2 + $0x20] sm:$0xff] %v822_v31  ;;  %v823_v22 = vadd.f32 %v811_v25, %v791_v23  ;;  %v792_v59 = vmul.f32 %v2648_v15, %v760_v34  ;;  %v761_v13 = vmul.f32 %v1856_v60, %v2522_v21  ;;  %v2692_v39 = vadd.f32 %v955_v26, %v2644_v2 }
 0x403   :  { %831 = vst [vmem:[#allocation2 + $0x28] sm:$0xff] %v823_v22  ;;  %v824_v10 = vadd.f32 %v816_v1, %v792_v59  ;;  %v793_v45 = vmul.f32 %v2648_v15, %v761_v13  ;;  %1037 = vmatprep.mubr.f32.mxu0 %v2692_v39 }
 0x404   :  { %1038 = vmatmul.mubr.f32.gmra.mxu0 %v2695_v56 }
 0x405   :  { %832 = vst [vmem:[#allocation2 + $0x30] sm:$0xff] %v824_v10  ;;  %v825_v14 = vadd.f32 %v816_v1, %v793_v45  ;;  %1321 = vmatprep.mubr.f32.mxu0 %v3052_v28 }
 0x407   :  { %833 = vst [vmem:[#allocation2 + $0x38] sm:$0xff] %v825_v14 }
 0x4b8   :  { %v1761_v21 = vpop.f32.mrf.mxu0 }
 0x4ba   :  { %v1762_v27 = vpop.f32.mrf.mxu0 }
 0x4bb   :  { %v1763_v54 = vadd.f32 %v1762_v27, %v1761_v21 }
 0x4bc   :  { %v1764_v6 = vpop.f32.mrf.mxu0 }
 0x4bd   :  { %1591 = vmatmul.mubr.msk.f32.vlgmr.msra.gmra.mxu1 %vm3045_vm0, %v1763_v54 }
 0x4be   :  { %v1765_v2 = vpop.f32.mrf.mxu0  ;;  %1125 = vmatprep.mubr.f32.mxu1 %v3052_v28  ;;  %1774 = vmatpush3.msk.msra.mxu1 %vm2018_vm2, %v3053_v0  ;;  %vm3057_vm2 = vnez %v2951_v63  ;;  %v3075_v63 = vld [vmem:[#allocation5_spill] sm:$0xff] }
 0x4bf   :  { %v1766_v15 = vadd.f32 %v1765_v2, %v1764_v6  ;;  %1775 = vmatprep.subr.msk.mxu1 %vm2023_vm3, %v3053_v0  ;;  %vm3058_vm3 = vnez %v2953_v3 }
 0x4c0   :  { %v1767_v11 = vpop.f32.mrf.mxu0  ;;  %1776 = vmatpush3.msk.msra.mxu1 %vm3054_vm10, %v3053_v0  ;;  %vm3060_vm10 = vnez %v2957_v37 }
 0x4c1   :  { %1592 = vmatmul.mubr.msk.f32.gmra.mxu1 %vm3055_vm14, %v1766_v15  ;;  %1777 = vmatprep.subr.msk.mxu1 %vm3056_vm12, %v3053_v0  ;;  %vm3061_vm14 = vnez %v2959_v42  ;;  %vm3062_vm12 = vnez %v2961_v43  ;;  %v3081_v15 = vld [vmem:[#allocation6_spill] sm:$0xff] }
 0x4c2   :  { %v1768_v18 = vpop.f32.mrf.mxu0  ;;  %1131 = vmatprep.mubr.f32.mxu1 %v3052_v28  ;;  %1778 = vmatpush3.msk.msra.mxu1 %vm3057_vm2, %v3053_v0  ;;  %vm3063_vm2 = vnez %v2963_v47 }
 0x4c3   :  { %v1769_v57 = vadd.f32 %v1768_v18, %v1767_v11  ;;  %1779 = vmatprep.subr.msk.mxu1 %vm3058_vm3, %v3053_v0  ;;  %vm3064_vm3 = vmmov %vm3045_vm0 }
 0x4c4   :  { %v1770_v58 = vpop.f32.mrf.mxu0  ;;  %1780 = vmatpush3.msk.msra.mxu1 %vm3059_vm1, %v3053_v0  ;;  %vm3065_vm1 = vnez %v2965_v48 }
 0x4c5   :  { %1593 = vmatmul.mubr.msk.f32.gmra.mxu1 %vm3045_vm0, %v1769_v57  ;;  %1781 = vmatprep.subr.msk.mxu1 %vm3060_vm10, %v3053_v0  ;;  %vm3066_vm0 = vnez %v2967_v49  ;;  %vm3067_vm10 = vnez %v2969_v51 }
 0x4c6   :  { %v1771_v61 = vpop.f32.mrf.mxu0  ;;  %1137 = vmatprep.mubr.f32.mxu1 %v3052_v28  ;;  %1782 = vmatpush3.msk.msra.mxu1 %vm3061_vm14, %v3053_v0  ;;  %vm3068_vm14 = vnez %v2971_v52 }
 0x4c7   :  { %v1772_v62 = vadd.f32 %v1771_v61, %v1770_v58  ;;  %1783 = vmatprep.subr.msk.mxu1 %vm3062_vm12, %v3053_v0  ;;  %vm3069_vm12 = vnez %v2973_v32  ;;  %v1403_v58 = vpop.permute.xlu0 %1402 }
 0x4c8   :  { %1784 = vmatpush3.msk.msra.mxu1 %vm3063_vm2, %v3053_v0  ;;  %vm3070_vm2 = vnez %v2975_v36 }
 0x4c9   :  { %1594 = vmatmul.mubr.msk.f32.gmra.mxu1 %vm3064_vm3, %v1772_v62  ;;  %1785 = vmatprep.subr.msk.mxu1 %vm3065_vm1, %v3053_v0  ;;  %vm3071_vm3 = vnez %v2977_v38 }
 0x4ca   :  { %1786 = vmatpush3.msk.msra.mxu1 %vm3066_vm0, %v3053_v0 }
 0x4cb   :  { %1787 = vmatprep.subr.msk.mxu1 %vm3067_vm10, %v3053_v0 }
 0x4cc   :  { %1788 = vmatpush3.msk.msra.mxu1 %vm3068_vm14, %v3053_v0 }
 0x4cd   :  { %1789 = vmatprep.subr.msk.mxu1 %vm3069_vm12, %v3053_v0 }
 0x4ce   :  { %1790 = vmatpush3.msk.msra.mxu1 %vm3070_vm2, %v3053_v0 }
 0x4cf   :  { %1791 = vmatprep.subr.msk.mxu1 %vm3071_vm3, %v3053_v0 }
 0x4d0   :  { %1792 = vmatpush3.msk.msra.mxu1 %vm3034_vm9, %v3053_v0 }
 0x4d1   :  { %1793 = vmatprep.subr.msk.mxu1 %vm3035_vm5, %v3053_v0  ;;  %vm3072_vm5 = vnez %v2993_v29 }
 0x4d2   :  { %1794 = vmatpush3.msk.msra.mxu1 %vm3036_vm7, %v3053_v0  ;;  %vm3076_vm7 = vnez %v3075_v63 }
 0x4d3   :  { %1795 = vmatprep.subr.msk.mxu1 %vm3037_vm8, %v3053_v0  ;;  %vm3077_vm8 = vcmask 31744  }
 0x4d4   :  { %1796 = vmatpush3.msk.msra.mxu1 %vm3038_vm4, %v3053_v0  ;;  %vm3073_vm4 = vnez %v2999_v40  ;;  %vm3078_vm9 = vmmov %vm3077_vm8 }
 0x4d5   :  { %1797 = vmatprep.subr.msk.mxu1 %vm3039_vm6, %v3053_v0  ;;  %vm3074_vm6 = vnez %v3001_v50 }
 0x4d6   :  { %1798 = vmatpush3.msk.msra.mxu1 %vm3018_vm13, %v3053_v0  ;;  %vm3080_vm13 = vmmov %vm3077_vm8 }
 0x4d7   :  { %1799 = vmatprep.subr.msk.mxu1 %vm3072_vm5, %v3053_v0 }
 0x4d8   :  { %1800 = vmatpush3.msk.msra.mxu1 %vm3020_vm11, %v3053_v0  ;;  %vm3079_vm11 = vmmov %vm3077_vm8 }
 0x4d9   :  { %1801 = vmatprep.subr.msk.mxu1 %vm3021_vm15, %v3053_v0 }
 0x4da   :  { %1802 = vmatpush3.msk.msra.mxu1 %vm3073_vm4, %v3053_v0 }
 0x4db   :  { %1803 = vmatprep.subr.msk.mxu1 %vm3074_vm6, %v3053_v0 }
 0x4dc   :  { %1804 = vmatpush3.msk.msra.mxu1 %vm3076_vm7, %v3053_v0 }
 0x57d   :  { %v1121_v3 = vpop.f32.mrf.mxu1 }
 0x57e   :  { %v2802_v4 = vsub.f32 %v2662_v30, %v1121_v3 }
 0x57f   :  { %v1123_v37 = vpop.f32.mrf.mxu1 }
 0x580   :  { %v2805_v42 = vsub.f32 %v2660_v12, %v1123_v37  ;;  %v1152_v48 = vmul.f32 %v2802_v4, %v2802_v4 }
 0x581   :  { %v1127_v43 = vpop.f32.mrf.mxu1 }
 0x582   :  { %v1153_v47 = vmul.f32 %v2805_v42, %v2805_v42  ;;  %v2812_v49 = vsub.f32 %v2672_v16, %v1127_v43  ;;  %v3082_v43 = vld [vmem:[#allocation7_spill] sm:$0xff] }
 0x583   :  { %v1129_v51 = vpop.f32.mrf.mxu1 }
 0x584   :  { %v2815_v52 = vsub.f32 %v2668_v5, %v1129_v51  ;;  %1224 = vmatprep.mubr.f32.mxu1 %v1153_v47  ;;  %v1154_v38 = vmul.f32 %v2812_v49, %v2812_v49  ;;  %v1408_v51 = vpop.permute.xlu1 %1407 }
 0x585   :  { %v1133_v32 = vpop.f32.mrf.mxu1  ;;  %1225 = vmatmul.mubr.f32.vlgmr.msra.gmra.mxu1 %v1152_v48 }
 0x586   :  { %v1155_v36 = vmul.f32 %v2815_v52, %v2815_v52  ;;  %v2822_v41 = vsub.f32 %v2683_v19, %v1133_v32 }
 0x587   :  { %v1135_v44 = vpop.f32.mrf.mxu1 }
 0x588   :  { %v2825_v46 = vsub.f32 %v2680_v35, %v1135_v44  ;;  %1229 = vmatprep.mubr.f32.mxu1 %v1155_v36  ;;  %v1156_v7 = vmul.f32 %v2822_v41, %v2822_v41 }
 0x589   :  { %v1139_v53 = vpop.f32.mrf.mxu1  ;;  %1230 = vmatmul.mubr.f32.gmra.mxu1 %v1154_v38 }
 0x58a   :  { %v1157_v55 = vmul.f32 %v2825_v46, %v2825_v46  ;;  %v2832_v8 = vsub.f32 %v2695_v56, %v1139_v53  ;;  %v3083_v53 = vld [vmem:[#allocation8_spill] sm:$0xff] }
 0x58b   :  { %v1141_v29 = vpop.f32.mrf.mxu1 }
 0x58c   :  { %v2835_v33 = vsub.f32 %v2692_v39, %v1141_v29  ;;  %1234 = vmatprep.mubr.f32.mxu1 %v1157_v55  ;;  %v1158_v40 = vmul.f32 %v2832_v8, %v2832_v8  ;;  %v1413_v29 = vpop.permute.xlu0 %1412 }
 0x58d   :  { %1235 = vmatmul.mubr.f32.gmra.mxu1 %v1156_v7 }
 0x58e   :  { %v1159_v17 = vmul.f32 %v2835_v33, %v2835_v33 }
 0x590   :  { %1239 = vmatprep.mubr.f32.mxu1 %v1159_v17 }
 0x591   :  { %1240 = vmatmul.mubr.f32.gmra.mxu1 %v1158_v40 }
 0x645   :  { %v1805_v50 = vpop.f32.mrf.mxu1 }
 0x647   :  { %v1806_v12 = vpop.f32.mrf.mxu1 }
 0x648   :  { %v1807_v30 = vadd.f32 %v1806_v12, %v1805_v50 }
 0x649   :  { %v1808_v5 = vpop.f32.mrf.mxu1 }
 0x64a   :  { %1629 = vmatmul.mubr.msk.f32.vlgmr.msra.gmra.mxu0 %vm3077_vm8, %v1807_v30 }
 0x64b   :  { %v1809_v16 = vpop.f32.mrf.mxu1  ;;  %1327 = vmatprep.mubr.f32.mxu0 %v3052_v28 }
 0x64c   :  { %v1810_v35 = vadd.f32 %v1809_v16, %v1808_v5  ;;  %v1418_v5 = vpop.permute.xlu1 %1417 }
 0x64d   :  { %v1811_v20 = vpop.f32.mrf.mxu1 }
 0x64e   :  { %1630 = vmatmul.mubr.msk.f32.gmra.mxu0 %vm3078_vm9, %v1810_v35 }
 0x64f   :  { %v1812_v25 = vpop.f32.mrf.mxu1  ;;  %1333 = vmatprep.mubr.f32.mxu0 %v3052_v28 }
 0x650   :  { %v1813_v19 = vadd.f32 %v1812_v25, %v1811_v20 }
 0x651   :  { %v1814_v24 = vpop.f32.mrf.mxu1 }
 0x652   :  { %1631 = vmatmul.mubr.msk.f32.gmra.mxu0 %vm3079_vm11, %v1813_v19 }
 0x653   :  { %v1815_v31 = vpop.f32.mrf.mxu1  ;;  %1339 = vmatprep.mubr.f32.mxu0 %v3052_v28 }
 0x654   :  { %v1816_v23 = vadd.f32 %v1815_v31, %v1814_v24 }
 0x656   :  { %1632 = vmatmul.mubr.msk.f32.gmra.mxu0 %vm3080_vm13, %v1816_v23 }
 0x70a   :  { %v1323_v34 = vpop.f32.mrf.mxu0 }
 0x70b   :  { %v1324_v60 = vadd.f32 1e-05, %v1323_v34 }
 0x70c   :  { %v1325_v26 = vpop.f32.mrf.mxu0 }
 0x70d   :  { %1857 = vrsqrt.f32 %v1324_v60  ;;  %v1326_v22 = vadd.f32 1e-05, %v1325_v26 }
 0x70e   :  { %v1329_v59 = vpop.f32.mrf.mxu0 }
 0x70f   :  { %1859 = vrsqrt.f32 %v1326_v22  ;;  %v1330_v13 = vadd.f32 1e-05, %v1329_v59 }
 0x710   :  { %v1331_v39 = vpop.f32.mrf.mxu0 }
 0x711   :  { %1861 = vrsqrt.f32 %v1330_v13  ;;  %v1332_v1 = vadd.f32 1e-05, %v1331_v39 }
 0x712   :  { %v1335_v56 = vpop.f32.mrf.mxu0 }
 0x713   :  { %1863 = vrsqrt.f32 %v1332_v1  ;;  %v1336_v10 = vadd.f32 1e-05, %v1335_v56 }
 0x714   :  { %v1337_v45 = vpop.f32.mrf.mxu0 }
 0x715   :  { %1865 = vrsqrt.f32 %v1336_v10  ;;  %v1338_v14 = vadd.f32 1e-05, %v1337_v45 }
 0x716   :  { %v1341_v28 = vpop.f32.mrf.mxu0 }
 0x717   :  { %1867 = vrsqrt.f32 %v1338_v14  ;;  %v1342_v21 = vadd.f32 1e-05, %v1341_v28 }
 0x718   :  { %v1343_v27 = vpop.f32.mrf.mxu0 }
 0x719   :  { %1869 = vrsqrt.f32 %v1342_v21  ;;  %v1344_v54 = vadd.f32 1e-05, %v1343_v27 }
 0x71a   :  { %v1858_v6 = vpop.eup %1857 }
 0x71b   :  { %v1354_v2 = vmul.f32 %v1858_v6, %v2802_v4  ;;  %1871 = vrsqrt.f32 %v1344_v54 }
 0x71c   :  { %v1860_v0 = vpop.eup %1859 }
 0x71d   :  { %v1387_v11 = vmul.f32 %v3081_v15, %v1354_v2  ;;  %v1355_v18 = vmul.f32 %v1860_v0, %v2805_v42 }
 0x71e   :  { %v1862_v57 = vpop.eup %1861 }
 0x71f   :  { %v1420_v61 = vadd.f32 %v1403_v58, %v1387_v11  ;;  %v1388_v62 = vmul.f32 %v3081_v15, %v1355_v18  ;;  %v1356_v63 = vmul.f32 %v1862_v57, %v2812_v49 }
 0x720   :  { %v1864_v3 = vpop.eup %1863 }
 0x721   :  { %1429 = vst [vmem:[#allocation2 + $0x40] sm:$0xff] %v1420_v61  ;;  %v1421_v37 = vadd.f32 %v1403_v58, %v1388_v62  ;;  %v1389_v47 = vmul.f32 %v3082_v43, %v1356_v63  ;;  %v1357_v4 = vmul.f32 %v1864_v3, %v2815_v52 }
 0x722   :  { %v1866_v48 = vpop.eup %1865 }
 0x723   :  { %1430 = vst [vmem:[#allocation2 + $0x48] sm:$0xff] %v1421_v37  ;;  %v1422_v32 = vadd.f32 %v1408_v51, %v1389_v47  ;;  %v1390_v42 = vmul.f32 %v3082_v43, %v1357_v4  ;;  %v1358_v36 = vmul.f32 %v1866_v48, %v2822_v41 }
 0x724   :  { %v1868_v38 = vpop.eup %1867 }
 0x725   :  { %1431 = vst [vmem:[#allocation2 + $0x50] sm:$0xff] %v1422_v32  ;;  %v1423_v44 = vadd.f32 %v1408_v51, %v1390_v42  ;;  %v1391_v49 = vmul.f32 %v3083_v53, %v1358_v36  ;;  %v1359_v55 = vmul.f32 %v1868_v38, %v2825_v46 }
 0x726   :  { %v1870_v7 = vpop.eup %1869 }
 0x727   :  { %1432 = vst [vmem:[#allocation2 + $0x58] sm:$0xff] %v1423_v44  ;;  %v1424_v17 = vadd.f32 %v1413_v29, %v1391_v49  ;;  %v1392_v52 = vmul.f32 %v3083_v53, %v1359_v55  ;;  %v1360_v40 = vmul.f32 %v1870_v7, %v2832_v8 }
 0x728   :  { %v1872_v50 = vpop.eup %1871 }
 0x729   :  { %1433 = vst [vmem:[#allocation2 + $0x60] sm:$0xff] %v1424_v17  ;;  %v1425_v12 = vadd.f32 %v1413_v29, %v1392_v52  ;;  %v1393_v41 = vmul.f32 %v2657_v9, %v1360_v40  ;;  %v1361_v30 = vmul.f32 %v1872_v50, %v2835_v33 }
 0x72b   :  { %1434 = vst [vmem:[#allocation2 + $0x68] sm:$0xff] %v1425_v12  ;;  %v1426_v46 = vadd.f32 %v1418_v5, %v1393_v41  ;;  %v1394_v16 = vmul.f32 %v2657_v9, %v1361_v30 }
 0x72d   :  { %1435 = vst [vmem:[#allocation2 + $0x70] sm:$0xff] %v1426_v46  ;;  %v1427_v35 = vadd.f32 %v1418_v5, %v1394_v16 }
 0x72f   :  { %1436 = vst [vmem:[#allocation2 + $0x78] sm:$0xff] %v1427_v35 }
 0x730   :  { %1884 = shalt.err (!%p1881_p4)
}
 0x731   :  { %s1899_s11 = smov 256   ;;  %s1900_s12 = smov 16  }
 0x732   :  { %1448 = dma.vmem_to_hbm [thread:$0]  %s1443_s10, 2048, %s2872_s5, [#allocation3], %s1899_s11, %s1899_s11, %s1900_s12  }
 0x733   :  { %1893 = dma.done.wait [#allocation3], 2048  }
 0x734   :  { %1894 = vsyncadd [#allocation3], 4294965248 }
 0x735   :  { %1452 = vsyncpa [#allocation3], 1 }

</bundles_post_ra>
